<compile_context>
chip_gen: v6e
topology: v6e:2x2x1
jax: 0.10.0
libtpu: 0.0.40
codegen_flags: <defaults>
</compile_context>

<pallas_src>
import functools

import jax
import jax.numpy as jnp
from jax import lax
from jax.experimental import pallas as pl
from jax.experimental.pallas import tpu as pltpu


_VMEM_LIMIT = 40 * 1024 * 1024   # comfortably under v7x's 64 MiB physical VMEM
_MIN_W_STREAM = 8                # below this, padded-width waste beats savings


def _round_up(x, m):
    return (x + m - 1) // m * m


def _pick_tile(dim, max_tile, quantum):
    """Pick a tile size for `dim`.

    Returns (tile, padded_dim). tile == dim (full extent; no (8,128) constraint
    applies to full-extent blocks) when dim <= max_tile, otherwise the largest
    multiple of `quantum` <= max_tile that divides dim. Falls back to padding
    only if no divisor exists (never triggered for ResNet-50 shapes)."""
    if dim <= max_tile:
        return dim, dim
    best = 0
    t = quantum
    while t <= max_tile:
        if dim % t == 0:
            best = t
        t += quantum
    if best:
        return best, dim
    padded = _round_up(dim, quantum)
    best = quantum
    t = quantum
    while t <= max_tile:
        if padded % t == 0:
            best = t
        t += quantum
    return best, padded


# ----------------------------------------------------------------------------
# Fused conv-as-matmul kernel: A(bf16) @ W(bf16, BN-scale pre-folded) with f32
# accumulation, plus bias / residual-add / ReLU epilogue on the last K step.
# ----------------------------------------------------------------------------
def _fused_matmul_kernel(a_ref, b_ref, bias_ref, *rest, relu, has_res):
    if has_res:
        res_ref, o_ref, acc_ref = rest
    else:
        o_ref, acc_ref = rest

    @pl.when(pl.program_id(2) == 0)
    def _():
        acc_ref[...] = jnp.zeros_like(acc_ref)

    acc_ref[...] += jnp.dot(a_ref[...], b_ref[...],
                            preferred_element_type=jnp.float32)

    @pl.when(pl.program_id(2) == pl.num_programs(2) - 1)
    def _():
        y = acc_ref[...] + bias_ref[...]
        if has_res:
            y = y + res_ref[...].astype(jnp.float32)
        if relu:
            y = jnp.maximum(y, 0.0)
        o_ref[...] = y.astype(o_ref.dtype)


def fused_matmul(a, w, bias, residual=None, relu=False,
                 out_dtype=jnp.bfloat16):
    """(M,K)@(K,N) + bias [+ residual] [+ ReLU]; bf16 operands, f32 accumulate."""
    M, K = a.shape
    Kw, N = w.shape
    assert K == Kw
    tm, Mp = _pick_tile(M, 1024, 16)    # M quantum 16: bf16 packs 2 rows/sublane
    tn, Np = _pick_tile(N, 512, 128)
    tk, Kp = _pick_tile(K, 2048, 128)
    # Padding paths below never trigger for ResNet-50 shapes.
    if Mp != M:
        a = jnp.pad(a, ((0, Mp - M), (0, 0)))
    if Kp != K:
        a = jnp.pad(a, ((0, 0), (0, Kp - K)))
        w = jnp.pad(w, ((0, Kp - K), (0, 0)))
    if Np != N:
        w = jnp.pad(w, ((0, 0), (0, Np - N)))
        bias = jnp.pad(bias, ((0, 0), (0, Np - N)))
    has_res = residual is not None
    if has_res and (Mp != M or Np != N):
        residual = jnp.pad(residual, ((0, Mp - M), (0, Np - N)))

    in_specs = [pl.BlockSpec((tm, tk), lambda i, j, k: (i, k)),
                pl.BlockSpec((tk, tn), lambda i, j, k: (k, j)),
                pl.BlockSpec((1, tn), lambda i, j, k: (0, j))]
    inputs = [a, w, bias]
    if has_res:
        in_specs.append(pl.BlockSpec((tm, tn), lambda i, j, k: (i, j)))
        inputs.append(residual)

    out = pl.pallas_call(
        functools.partial(_fused_matmul_kernel, relu=relu, has_res=has_res),
        out_shape=jax.ShapeDtypeStruct((Mp, Np), out_dtype),
        grid_spec=pltpu.PrefetchScalarGridSpec(
            num_scalar_prefetch=0,
            grid=(Mp // tm, Np // tn, Kp // tk),
            in_specs=in_specs,
            out_specs=pl.BlockSpec((tm, tn), lambda i, j, k: (i, j)),
            scratch_shapes=[pltpu.VMEM((tm, tn), jnp.float32)]),
        compiler_params=pltpu.CompilerParams(
            dimension_semantics=("parallel", "parallel", "arbitrary"),
            vmem_limit_bytes=_VMEM_LIMIT),
    )(*inputs)
    if Mp != M or Np != N:
        out = out[:M, :N]
    return out


# ----------------------------------------------------------------------------
# Streaming 3x3 / stride-1 / pad-1 conv: no HBM im2col.
# One image per grid step; the zero-padded image is built once per image in a
# VMEM scratch and the nine taps are sliced there and fed straight to the MXU.
# ----------------------------------------------------------------------------
def _conv3x3_s1_kernel(x_ref, w_ref, b_ref, o_ref, xs_ref, *, relu):
    # Block shapes:
    #   x_ref : (1, H, W, Cin)      bf16 activation (one image)
    #   w_ref : (9*Cin, tn)         bf16, rows ordered (di, dj, cin); BN folded
    #   b_ref : (1, tn)             f32 folded-BN bias
    #   o_ref : (1, H, W, tn)       bf16 output
    #   xs_ref: (H+2, Ws+16, Cin)   f32 scratch, Ws = round_up(W, 8).
    # Scratch layout: xs[1+h, 8+w, :] = x[h, w, :]; everything else is zero,
    # so xs[r, c+7] == zero-padded-x[r, c] for 0 <= c <= W+1.  The content
    # store lands at an aligned sublane offset (8); the +-1 tap offsets show
    # up only in (static, unaligned-start) loads below.
    _, H, W, Cin = x_ref.shape
    tn = o_ref.shape[-1]
    Ws = xs_ref.shape[1] - 16

    @pl.when(pl.program_id(1) == 0)         # (re)build padded image once per n
    def _():
        xs_ref[...] = jnp.zeros(xs_ref.shape, xs_ref.dtype)
        xs_ref[1:1 + H, 8:8 + W, :] = x_ref[0].astype(jnp.float32)

    acc = jnp.zeros((H * Ws, tn), jnp.float32)
    for di in range(3):
        for dj in range(3):
            t = di * 3 + dj
            # A[h, w'] = padded-x[h + di, w' + dj]; columns w' >= W are junk
            # (in-bounds, finite, discarded by the [:, :W, :] slice below).
            a = xs_ref[di:di + H, 7 + dj:7 + dj + Ws, :]
            a = a.reshape(H * Ws, Cin).astype(jnp.bfloat16)
            wt = w_ref[t * Cin:(t + 1) * Cin, :]
            acc = acc + jnp.dot(a, wt, preferred_element_type=jnp.float32)

    y = acc + b_ref[...]
    if relu:
        y = jnp.maximum(y, 0.0)
    y = y.reshape(H, Ws, tn)
    o_ref[0] = y[:, :W, :].astype(o_ref.dtype)


def conv3x3_s1(x, w, b, relu=True):
    """Streaming 3x3 conv (stride 1, pad 1) + folded-BN bias (+ ReLU)."""
    N, H, W, Cin = x.shape
    Cout = w.shape[1]
    tn = min(Cout, 512)
    assert Cout % tn == 0
    Ws = _round_up(W, 8)
    return pl.pallas_call(
        functools.partial(_conv3x3_s1_kernel, relu=relu),
        out_shape=jax.ShapeDtypeStruct((N, H, W, Cout), jnp.bfloat16),
        grid_spec=pltpu.PrefetchScalarGridSpec(
            num_scalar_prefetch=0,
            grid=(N, Cout // tn),
            in_specs=[pl.BlockSpec((1, H, W, Cin), lambda n, j: (n, 0, 0, 0)),
                      pl.BlockSpec((9 * Cin, tn), lambda n, j: (0, j)),
                      pl.BlockSpec((1, tn), lambda n, j: (0, j))],
            out_specs=pl.BlockSpec((1, H, W, tn), lambda n, j: (n, 0, 0, j)),
            scratch_shapes=[pltpu.VMEM((H + 2, Ws + 16, Cin), jnp.float32)]),
        compiler_params=pltpu.CompilerParams(
            dimension_semantics=("parallel", "arbitrary"),
            vmem_limit_bytes=_VMEM_LIMIT),
    )(x, w, b)


# ----------------------------------------------------------------------------
# MaxPool 3x3 / stride 2 / pad 1: one kernel invocation per image.
# The padded image is split into its four (even/odd row, even/odd col) phases
# at the XLA level so every 3x3 tap is a contiguous slice in VMEM -- no
# (9, M, C) tap stack is materialized in HBM.
# ----------------------------------------------------------------------------
def _maxpool_kernel(p00_ref, p01_ref, p10_ref, p11_ref, o_ref, *, ho, wo):
    phases = ((p00_ref[0], p01_ref[0]), (p10_ref[0], p11_ref[0]))
    r = None
    for i in range(3):
        for j in range(3):
            src = phases[i % 2][j % 2]
            t = src[(i // 2):(i // 2) + ho, (j // 2):(j // 2) + wo, :]
            r = t if r is None else jnp.maximum(r, t)
    o_ref[0] = r


def maxpool2d_3x3s2(x):
    N, H, W, C = x.shape
    Ho = (H - 1) // 2 + 1
    Wo = (W - 1) // 2 + 1
    neg = jnp.asarray(jnp.finfo(x.dtype).min, x.dtype)
    Hp, Wp = 2 * Ho + 2, 2 * Wo + 2          # even-sized so all phases match
    xp = jnp.pad(x, ((0, 0), (1, Hp - H - 1), (1, Wp - W - 1), (0, 0)),
                 constant_values=neg)
    phases = [xp[:, i::2, j::2, :] for i in range(2) for j in range(2)]
    Hq, Wq = Ho + 1, Wo + 1
    return pl.pallas_call(
        functools.partial(_maxpool_kernel, ho=Ho, wo=Wo),
        out_shape=jax.ShapeDtypeStruct((N, Ho, Wo, C), x.dtype),
        grid=(N,),
        in_specs=[pl.BlockSpec((1, Hq, Wq, C), lambda n: (n, 0, 0, 0))] * 4,
        out_specs=pl.BlockSpec((1, Ho, Wo, C), lambda n: (n, 0, 0, 0)),
        compiler_params=pltpu.CompilerParams(dimension_semantics=("parallel",)),
    )(*phases)


# ----------------------------------------------------------------------------
# Fused head: global average pool + Flatten + Linear(2048, 2) + bias.
# ----------------------------------------------------------------------------
def _head_kernel(x_ref, w_ref, b_ref, o_ref):
    feats = jnp.mean(x_ref[...].astype(jnp.float32), axis=1)      # (N, C)
    o_ref[...] = jnp.dot(feats, w_ref[...],
                         preferred_element_type=jnp.float32) + b_ref[...]


def pallas_head(x_nhwc, fc_w, fc_b):
    N, H, W, C = x_nhwc.shape
    x = x_nhwc.reshape(N, H * W, C)
    Nout = fc_w.shape[1]
    return pl.pallas_call(
        _head_kernel,
        out_shape=jax.ShapeDtypeStruct((N, Nout), jnp.float32),
        grid=(1,),
        in_specs=[pl.BlockSpec((N, H * W, C), lambda i: (0, 0, 0)),
                  pl.BlockSpec((C, Nout), lambda i: (0, 0)),
                  pl.BlockSpec((1, Nout), lambda i: (0, 0))],
        out_specs=pl.BlockSpec((N, Nout), lambda i: (0, 0)),
    )(x, fc_w, fc_b)


# ----------------------------------------------------------------------------
# Conv glue.  Stride-1 3x3 convs go through the streaming kernel; the 7x7
# stem, stride-2 3x3 convs and tiny-spatial 3x3 convs keep the (small) im2col.
# ----------------------------------------------------------------------------
def _im2col(x, kh, kw, stride, padding):
    N, H, W, Cin = x.shape
    if kh == 1 and kw == 1 and padding == 0:
        if stride != 1:
            x = x[:, ::stride, ::stride, :]
        Ho, Wo = x.shape[1], x.shape[2]
        return x.reshape(N * Ho * Wo, Cin), N, Ho, Wo
    Ho = (H + 2 * padding - kh) // stride + 1
    Wo = (W + 2 * padding - kw) // stride + 1
    xp = jnp.pad(x, ((0, 0), (padding, padding), (padding, padding), (0, 0)))
    cols = [xp[:, i:i + stride * Ho:stride, j:j + stride * Wo:stride, :]
            for i in range(kh) for j in range(kw)]
    patches = jnp.concatenate(cols, axis=-1).reshape(N * Ho * Wo, kh * kw * Cin)
    return patches, N, Ho, Wo


def conv_bn(x_nhwc, cp, stride, padding, relu, residual=None):
    """conv (no bias) + folded eval-BN (+ residual) (+ ReLU) in one kernel."""
    kh, kw = cp["kh"], cp["kw"]
    if (kh == 3 and kw == 3 and stride == 1 and padding == 1
            and residual is None and x_nhwc.shape[2] >= _MIN_W_STREAM):
        return conv3x3_s1(x_nhwc, cp["w"], cp["b"], relu=relu)
    a, n, ho, wo = _im2col(x_nhwc, kh, kw, stride, padding)
    out = fused_matmul(a, cp["w"], cp["b"], residual=residual, relu=relu)
    return out.reshape(n, ho, wo, -1)


# ----------------------------------------------------------------------------
# ResNet-50 parameters (deterministic synthetic init) and inference prep.
# ----------------------------------------------------------------------------
class ParamGen:
    def __init__(self, seed=0):
        self.key = jax.random.PRNGKey(seed)
        self.count = 0

    def _next(self):
        self.count += 1
        return jax.random.fold_in(self.key, self.count)

    def conv(self, cout, cin, kh, kw):
        fan_in = cin * kh * kw
        std = (2.0 / fan_in) ** 0.5
        return std * jax.random.normal(self._next(), (cout, cin, kh, kw), jnp.float32)

    def bn(self, c):
        return dict(
            gamma=1.0 + 0.1 * jax.random.normal(self._next(), (c,), jnp.float32),
            beta=0.1 * jax.random.normal(self._next(), (c,), jnp.float32),
            mean=0.1 * jax.random.normal(self._next(), (c,), jnp.float32),
            var=1.0 + 0.1 * jnp.abs(jax.random.normal(self._next(), (c,), jnp.float32)),
        )

    def linear(self, out_f, in_f):
        bound = 1.0 / (in_f ** 0.5)
        w = jax.random.uniform(self._next(), (out_f, in_f), jnp.float32, -bound, bound)
        b = jax.random.uniform(self._next(), (out_f,), jnp.float32, -bound, bound)
        return w, b


def make_bottleneck_params(pg, cin, width, stride):
    p = {
        "conv1": pg.conv(width, cin, 1, 1),
        "bn1": pg.bn(width),
        "conv2": pg.conv(width, width, 3, 3),
        "bn2": pg.bn(width),
        "conv3": pg.conv(width * 4, width, 1, 1),
        "bn3": pg.bn(width * 4),
        "stride": stride,
    }
    if stride != 1 or cin != width * 4:
        p["down_conv"] = pg.conv(width * 4, cin, 1, 1)
        p["down_bn"] = pg.bn(width * 4)
    return p


def make_resnet50_params(seed=0):
    pg = ParamGen(seed)
    params = {"conv1": pg.conv(64, 3, 7, 7), "bn1": pg.bn(64)}
    layers = []
    cin = 64
    for width, blocks, stride in [(64, 3, 1), (128, 4, 2), (256, 6, 2), (512, 3, 2)]:
        layer = []
        for b in range(blocks):
            s = stride if b == 0 else 1
            layer.append(make_bottleneck_params(pg, cin, width, s))
            cin = width * 4
        layers.append(layer)
    params["layers"] = layers
    params["fc_w"], params["fc_b"] = pg.linear(2, 2048)  # nn.Linear(2048, 2)
    return params


def prepare_inference_params(params, eps=1e-5):
    """One-time prep: fold eval-BN into conv weights, build (K, Cout) bf16
    weight matrices (row order (kh, kw, cin)) and f32 bias rows."""
    def fold(w_oihw, bn):
        cout, cin, kh, kw = w_oihw.shape
        scale = bn["gamma"] / jnp.sqrt(bn["var"] + eps)
        wmat = jnp.transpose(w_oihw, (2, 3, 1, 0)).reshape(kh * kw * cin, cout)
        return {"w": (wmat * scale[None, :]).astype(jnp.bfloat16),
                "b": (bn["beta"] - bn["mean"] * scale).reshape(1, cout).astype(jnp.float32),
                "kh": kh, "kw": kw}

    ip = {"stem": fold(params["conv1"], params["bn1"])}
    layers = []
    for layer in params["layers"]:
        blks = []
        for blk in layer:
            b = {"conv1": fold(blk["conv1"], blk["bn1"]),
                 "conv2": fold(blk["conv2"], blk["bn2"]),
                 "conv3": fold(blk["conv3"], blk["bn3"]),
                 "stride": blk["stride"]}
            if "down_conv" in blk:
                b["down"] = fold(blk["down_conv"], blk["down_bn"])
            blks.append(b)
        layers.append(blks)
    ip["layers"] = layers
    ip["fc_w"] = params["fc_w"].T.astype(jnp.float32)            # (2048, 2)
    ip["fc_b"] = params["fc_b"].reshape(1, -1).astype(jnp.float32)
    return ip


# ----------------------------------------------------------------------------
# Forward pass
# ----------------------------------------------------------------------------
def bottleneck_forward(x, p):
    N, H, W, Cin = x.shape
    stride = p["stride"]
    if "down" in p:
        a_id, _, _, _ = _im2col(x, 1, 1, stride, 0)
        identity = fused_matmul(a_id, p["down"]["w"], p["down"]["b"], relu=False)
    else:
        identity = x.reshape(N * H * W, Cin)
    out = conv_bn(x, p["conv1"], stride=1, padding=0, relu=True)
    out = conv_bn(out, p["conv2"], stride=stride, padding=1, relu=True)
    # conv3 + bn3 + residual add + final ReLU all fused into one kernel epilogue
    out = conv_bn(out, p["conv3"], stride=1, padding=0, relu=True,
                  residual=identity)
    return out


def resnet_feature_model_forward(x_nchw, iparams):
    """Equivalent of ResNetFeatureModel(output_layer='avgpool').forward."""
    x = jnp.transpose(x_nchw, (0, 2, 3, 1)).astype(jnp.bfloat16)   # NCHW -> NHWC
    # Stem: conv1 (7x7/2, pad 3) + bn1 + relu fused; then maxpool (3x3/2, pad 1)
    x = conv_bn(x, iparams["stem"], stride=2, padding=3, relu=True)
    x = maxpool2d_3x3s2(x)
    # layer1..layer4
    for layer in iparams["layers"]:
        for blk in layer:
            x = bottleneck_forward(x, blk)
    # avgpool -> flatten -> Linear(2048, 2), fused in one kernel
    return pallas_head(x, iparams["fc_w"], iparams["fc_b"])


if __name__ == "__main__":
    key = jax.random.PRNGKey(0)
    k1, k2, k3, k4 = jax.random.split(key, 4)

    # --- unit test: streaming 3x3 conv vs. XLA reference --------------------
    Ht, Wt_, Cin_t, Cout_t = 10, 12, 64, 128
    xt = jax.random.normal(k1, (2, Ht, Wt_, Cin_t), jnp.float32).astype(jnp.bfloat16)
    wt = (0.1 * jax.random.normal(k2, (9 * Cin_t, Cout_t), jnp.float32)).astype(jnp.bfloat16)
    bt = 0.1 * jax.random.normal(k3, (1, Cout_t), jnp.float32)
    got = conv3x3_s1(xt, wt, bt, relu=True).astype(jnp.float32)
    ref = lax.conv_general_dilated(
        xt.astype(jnp.float32),
        wt.astype(jnp.float32).reshape(3, 3, Cin_t, Cout_t),
        window_strides=(1, 1), padding=((1, 1), (1, 1)),
        dimension_numbers=("NHWC", "HWIO", "NHWC"))
    ref = jnp.maximum(ref + bt.reshape(1, 1, 1, Cout_t), 0.0)
    assert jnp.allclose(got, ref, atol=0.1, rtol=0.1), "streaming conv3x3 mismatch"

    # --- unit test: maxpool vs. reduce_window -------------------------------
    xm = jax.random.normal(k4, (2, 13, 13, 64), jnp.float32).astype(jnp.bfloat16)
    got_mp = maxpool2d_3x3s2(xm)
    ref_mp = lax.reduce_window(
        xm, jnp.array(-jnp.inf, xm.dtype), lax.max,
        (1, 3, 3, 1), (1, 2, 2, 1), ((0, 0), (1, 1), (1, 1), (0, 0)))
    assert jnp.array_equal(got_mp, ref_mp), "maxpool mismatch"

    # --- full model ----------------------------------------------------------
    # Small input consistent with the module: NCHW, 3 channels (ResNet stem).
    x = jax.random.normal(key, (2, 3, 32, 32), jnp.float32)
    params = make_resnet50_params(seed=0)
    iparams = prepare_inference_params(params)
    fwd = jax.jit(lambda inp: resnet_feature_model_forward(inp, iparams))
    out = jax.block_until_ready(fwd(x))
    assert out.shape == (2, 2), out.shape
    assert bool(jnp.all(jnp.isfinite(out)))
    print("KERNEL_OK")
</pallas_src>

<mosaic_0001>
module attributes {stable_mosaic.version = 11 : i64} {
  func.func @_conv3x3_s1_kernel(%arg0: i32, %arg1: i32, %arg2: memref<1x10x12x64xbf16, #tpu.memory_space<vmem>>, %arg3: memref<576x128xbf16, #tpu.memory_space<vmem>>, %arg4: memref<1x128xf32, #tpu.memory_space<vmem>>, %arg5: memref<1x10x12x128xbf16, #tpu.memory_space<vmem>>, %arg6: memref<12x32x64xf32, #tpu.memory_space<vmem>>) attributes {dimension_semantics = [#tpu.dimension_semantics<parallel>, #tpu.dimension_semantics<arbitrary>], iteration_bounds = array<i64: 2, 1>, scalar_prefetch = 0 : i64, scratch_operands = 1 : i64, tpu.core_type = #tpu.core_type<tc>, window_params = [{transform_indices = @transform_0, window_bounds = array<i64: 1, 10, 12, 64>}, {transform_indices = @transform_1, window_bounds = array<i64: 576, 128>}, {transform_indices = @transform_2, window_bounds = array<i64: 1, 128>}, {transform_indices = @transform_3, window_bounds = array<i64: 1, 10, 12, 128>}]} {
    %c0_i32 = arith.constant 0 : i32
    %0 = arith.cmpi eq, %arg1, %c0_i32 : i32
    %1 = arith.extui %0 : i1 to i32
    %c0_i32_0 = arith.constant 0 : i32
    %2 = arith.cmpi ne, %1, %c0_i32_0 : i32
    scf.if %2 {
      %cst_48 = arith.constant 0.000000e+00 : f32
      %69 = vector.broadcast %cst_48 : f32 to vector<12x32x64xf32>
      %c0_49 = arith.constant 0 : index
      %c0_50 = arith.constant 0 : index
      %c0_51 = arith.constant 0 : index
      %70 = vector.load %arg6[%c0_49, %c0_50, %c0_51] : memref<12x32x64xf32, #tpu.memory_space<vmem>>, vector<12x32x64xf32>
      tpu.vector_store %arg6[%c0_49, %c0_50, %c0_51], %69 {strides = array<i32>} : memref<12x32x64xf32, #tpu.memory_space<vmem>>, vector<12x32x64xf32>,
      %c0_52 = arith.constant 0 : index
      %c0_53 = arith.constant 0 : index
      %c0_54 = arith.constant 0 : index
      %c0_55 = arith.constant 0 : index
      %71 = vector.load %arg2[%c0_52, %c0_53, %c0_54, %c0_55] : memref<1x10x12x64xbf16, #tpu.memory_space<vmem>>, vector<1x10x12x64xbf16>
      %72 = vector.shape_cast %71 : vector<1x10x12x64xbf16> to vector<10x12x64xbf16>
      %73 = arith.extf %72 : vector<10x12x64xbf16> to vector<10x12x64xf32>
      %c1_56 = arith.constant 1 : index
      %c8_57 = arith.constant 8 : index
      %c0_58 = arith.constant 0 : index
      %74 = vector.load %arg6[%c1_56, %c8_57, %c0_58] : memref<12x32x64xf32, #tpu.memory_space<vmem>>, vector<10x12x64xf32>
      tpu.vector_store %arg6[%c1_56, %c8_57, %c0_58], %73 {strides = array<i32>} : memref<12x32x64xf32, #tpu.memory_space<vmem>>, vector<10x12x64xf32>,
    } else {
    }
    %cst = arith.constant 0.000000e+00 : f32
    %3 = vector.broadcast %cst : f32 to vector<160x128xf32>
    %c0 = arith.constant 0 : index
    %c7 = arith.constant 7 : index
    %c0_1 = arith.constant 0 : index
    %4 = vector.load %arg6[%c0, %c7, %c0_1] : memref<12x32x64xf32, #tpu.memory_space<vmem>>, vector<10x16x64xf32>
    %5 = vector.shape_cast %4 : vector<10x16x64xf32> to vector<160x64xf32>
    %6 = arith.truncf %5 : vector<160x64xf32> to vector<160x64xbf16>
    %c0_2 = arith.constant 0 : index
    %c0_3 = arith.constant 0 : index
    %7 = vector.load %arg3[%c0_2, %c0_3] : memref<576x128xbf16, #tpu.memory_space<vmem>>, vector<64x128xbf16>
    %cst_4 = arith.constant dense<0.000000e+00> : vector<160x128xf32>
    %8 = tpu.matmul %6, %7, %cst_4 {dimension_numbers = #tpu.dot_dimension_numbers<[1], [0], [0], [1], [0, 0, 1, 1], [], []>} : vector<160x64xbf16>, vector<64x128xbf16>, vector<160x128xf32> -> vector<160x128xf32>
    %9 = arith.addf %3, %8 : vector<160x128xf32>
    %c0_5 = arith.constant 0 : index
    %c8 = arith.constant 8 : index
    %c0_6 = arith.constant 0 : index
    %10 = vector.load %arg6[%c0_5, %c8, %c0_6] : memref<12x32x64xf32, #tpu.memory_space<vmem>>, vector<10x16x64xf32>
    %11 = vector.shape_cast %10 : vector<10x16x64xf32> to vector<160x64xf32>
    %12 = arith.truncf %11 : vector<160x64xf32> to vector<160x64xbf16>
    %c64 = arith.constant 64 : index
    %c0_7 = arith.constant 0 : index
    %13 = vector.load %arg3[%c64, %c0_7] : memref<576x128xbf16, #tpu.memory_space<vmem>>, vector<64x128xbf16>
    %cst_8 = arith.constant dense<0.000000e+00> : vector<160x128xf32>
    %14 = tpu.matmul %12, %13, %cst_8 {dimension_numbers = #tpu.dot_dimension_numbers<[1], [0], [0], [1], [0, 0, 1, 1], [], []>} : vector<160x64xbf16>, vector<64x128xbf16>, vector<160x128xf32> -> vector<160x128xf32>
    %15 = arith.addf %9, %14 : vector<160x128xf32>
    %c0_9 = arith.constant 0 : index
    %c9 = arith.constant 9 : index
    %c0_10 = arith.constant 0 : index
    %16 = vector.load %arg6[%c0_9, %c9, %c0_10] : memref<12x32x64xf32, #tpu.memory_space<vmem>>, vector<10x16x64xf32>
    %17 = vector.shape_cast %16 : vector<10x16x64xf32> to vector<160x64xf32>
    %18 = arith.truncf %17 : vector<160x64xf32> to vector<160x64xbf16>
    %c128 = arith.constant 128 : index
    %c0_11 = arith.constant 0 : index
    %19 = vector.load %arg3[%c128, %c0_11] : memref<576x128xbf16, #tpu.memory_space<vmem>>, vector<64x128xbf16>
    %cst_12 = arith.constant dense<0.000000e+00> : vector<160x128xf32>
    %20 = tpu.matmul %18, %19, %cst_12 {dimension_numbers = #tpu.dot_dimension_numbers<[1], [0], [0], [1], [0, 0, 1, 1], [], []>} : vector<160x64xbf16>, vector<64x128xbf16>, vector<160x128xf32> -> vector<160x128xf32>
    %21 = arith.addf %15, %20 : vector<160x128xf32>
    %c1 = arith.constant 1 : index
    %c7_13 = arith.constant 7 : index
    %c0_14 = arith.constant 0 : index
    %22 = vector.load %arg6[%c1, %c7_13, %c0_14] : memref<12x32x64xf32, #tpu.memory_space<vmem>>, vector<10x16x64xf32>
    %23 = vector.shape_cast %22 : vector<10x16x64xf32> to vector<160x64xf32>
    %24 = arith.truncf %23 : vector<160x64xf32> to vector<160x64xbf16>
    %c192 = arith.constant 192 : index
    %c0_15 = arith.constant 0 : index
    %25 = vector.load %arg3[%c192, %c0_15] : memref<576x128xbf16, #tpu.memory_space<vmem>>, vector<64x128xbf16>
    %cst_16 = arith.constant dense<0.000000e+00> : vector<160x128xf32>
    %26 = tpu.matmul %24, %25, %cst_16 {dimension_numbers = #tpu.dot_dimension_numbers<[1], [0], [0], [1], [0, 0, 1, 1], [], []>} : vector<160x64xbf16>, vector<64x128xbf16>, vector<160x128xf32> -> vector<160x128xf32>
    %27 = arith.addf %21, %26 : vector<160x128xf32>
    %c1_17 = arith.constant 1 : index
    %c8_18 = arith.constant 8 : index
    %c0_19 = arith.constant 0 : index
    %28 = vector.load %arg6[%c1_17, %c8_18, %c0_19] : memref<12x32x64xf32, #tpu.memory_space<vmem>>, vector<10x16x64xf32>
    %29 = vector.shape_cast %28 : vector<10x16x64xf32> to vector<160x64xf32>
    %30 = arith.truncf %29 : vector<160x64xf32> to vector<160x64xbf16>
    %c256 = arith.constant 256 : index
    %c0_20 = arith.constant 0 : index
    %31 = vector.load %arg3[%c256, %c0_20] : memref<576x128xbf16, #tpu.memory_space<vmem>>, vector<64x128xbf16>
    %cst_21 = arith.constant dense<0.000000e+00> : vector<160x128xf32>
    %32 = tpu.matmul %30, %31, %cst_21 {dimension_numbers = #tpu.dot_dimension_numbers<[1], [0], [0], [1], [0, 0, 1, 1], [], []>} : vector<160x64xbf16>, vector<64x128xbf16>, vector<160x128xf32> -> vector<160x128xf32>
    %33 = arith.addf %27, %32 : vector<160x128xf32>
    %c1_22 = arith.constant 1 : index
    %c9_23 = arith.constant 9 : index
    %c0_24 = arith.constant 0 : index
    %34 = vector.load %arg6[%c1_22, %c9_23, %c0_24] : memref<12x32x64xf32, #tpu.memory_space<vmem>>, vector<10x16x64xf32>
    %35 = vector.shape_cast %34 : vector<10x16x64xf32> to vector<160x64xf32>
    %36 = arith.truncf %35 : vector<160x64xf32> to vector<160x64xbf16>
    %c320 = arith.constant 320 : index
    %c0_25 = arith.constant 0 : index
    %37 = vector.load %arg3[%c320, %c0_25] : memref<576x128xbf16, #tpu.memory_space<vmem>>, vector<64x128xbf16>
    %cst_26 = arith.constant dense<0.000000e+00> : vector<160x128xf32>
    %38 = tpu.matmul %36, %37, %cst_26 {dimension_numbers = #tpu.dot_dimension_numbers<[1], [0], [0], [1], [0, 0, 1, 1], [], []>} : vector<160x64xbf16>, vector<64x128xbf16>, vector<160x128xf32> -> vector<160x128xf32>
    %39 = arith.addf %33, %38 : vector<160x128xf32>
    %c2 = arith.constant 2 : index
    %c7_27 = arith.constant 7 : index
    %c0_28 = arith.constant 0 : index
    %40 = vector.load %arg6[%c2, %c7_27, %c0_28] : memref<12x32x64xf32, #tpu.memory_space<vmem>>, vector<10x16x64xf32>
    %41 = vector.shape_cast %40 : vector<10x16x64xf32> to vector<160x64xf32>
    %42 = arith.truncf %41 : vector<160x64xf32> to vector<160x64xbf16>
    %c384 = arith.constant 384 : index
    %c0_29 = arith.constant 0 : index
    %43 = vector.load %arg3[%c384, %c0_29] : memref<576x128xbf16, #tpu.memory_space<vmem>>, vector<64x128xbf16>
    %cst_30 = arith.constant dense<0.000000e+00> : vector<160x128xf32>
    %44 = tpu.matmul %42, %43, %cst_30 {dimension_numbers = #tpu.dot_dimension_numbers<[1], [0], [0], [1], [0, 0, 1, 1], [], []>} : vector<160x64xbf16>, vector<64x128xbf16>, vector<160x128xf32> -> vector<160x128xf32>
    %45 = arith.addf %39, %44 : vector<160x128xf32>
    %c2_31 = arith.constant 2 : index
    %c8_32 = arith.constant 8 : index
    %c0_33 = arith.constant 0 : index
    %46 = vector.load %arg6[%c2_31, %c8_32, %c0_33] : memref<12x32x64xf32, #tpu.memory_space<vmem>>, vector<10x16x64xf32>
    %47 = vector.shape_cast %46 : vector<10x16x64xf32> to vector<160x64xf32>
    %48 = arith.truncf %47 : vector<160x64xf32> to vector<160x64xbf16>
    %c448 = arith.constant 448 : index
    %c0_34 = arith.constant 0 : index
    %49 = vector.load %arg3[%c448, %c0_34] : memref<576x128xbf16, #tpu.memory_space<vmem>>, vector<64x128xbf16>
    %cst_35 = arith.constant dense<0.000000e+00> : vector<160x128xf32>
    %50 = tpu.matmul %48, %49, %cst_35 {dimension_numbers = #tpu.dot_dimension_numbers<[1], [0], [0], [1], [0, 0, 1, 1], [], []>} : vector<160x64xbf16>, vector<64x128xbf16>, vector<160x128xf32> -> vector<160x128xf32>
    %51 = arith.addf %45, %50 : vector<160x128xf32>
    %c2_36 = arith.constant 2 : index
    %c9_37 = arith.constant 9 : index
    %c0_38 = arith.constant 0 : index
    %52 = vector.load %arg6[%c2_36, %c9_37, %c0_38] : memref<12x32x64xf32, #tpu.memory_space<vmem>>, vector<10x16x64xf32>
    %53 = vector.shape_cast %52 : vector<10x16x64xf32> to vector<160x64xf32>
    %54 = arith.truncf %53 : vector<160x64xf32> to vector<160x64xbf16>
    %c512 = arith.constant 512 : index
    %c0_39 = arith.constant 0 : index
    %55 = vector.load %arg3[%c512, %c0_39] : memref<576x128xbf16, #tpu.memory_space<vmem>>, vector<64x128xbf16>
    %cst_40 = arith.constant dense<0.000000e+00> : vector<160x128xf32>
    %56 = tpu.matmul %54, %55, %cst_40 {dimension_numbers = #tpu.dot_dimension_numbers<[1], [0], [0], [1], [0, 0, 1, 1], [], []>} : vector<160x64xbf16>, vector<64x128xbf16>, vector<160x128xf32> -> vector<160x128xf32>
    %57 = arith.addf %51, %56 : vector<160x128xf32>
    %c0_41 = arith.constant 0 : index
    %c0_42 = arith.constant 0 : index
    %58 = vector.load %arg4[%c0_41, %c0_42] : memref<1x128xf32, #tpu.memory_space<vmem>>, vector<1x128xf32>
    %59 = vector.broadcast %58 : vector<1x128xf32> to vector<160x128xf32>
    %60 = arith.addf %57, %59 : vector<160x128xf32>
    %cst_43 = arith.constant 0.000000e+00 : f32
    %61 = vector.broadcast %cst_43 : f32 to vector<160x128xf32>
    %62 = arith.maximumf %60, %61 : vector<160x128xf32>
    %63 = vector.shape_cast %62 : vector<160x128xf32> to vector<10x16x128xf32>
    %64 = vector.extract_strided_slice %63 {offsets = [0, 0, 0], sizes = [10, 12, 128], strides = [1, 1, 1]} : vector<10x16x128xf32> to vector<10x12x128xf32>
    %65 = arith.truncf %64 : vector<10x12x128xf32> to vector<10x12x128xbf16>
    %c0_44 = arith.constant 0 : index
    %c0_45 = arith.constant 0 : index
    %c0_46 = arith.constant 0 : index
    %c0_47 = arith.constant 0 : index
    %66 = vector.load %arg5[%c0_44, %c0_45, %c0_46, %c0_47] : memref<1x10x12x128xbf16, #tpu.memory_space<vmem>>, vector<1x10x12x128xbf16>
    %67 = vector.shape_cast %66 : vector<1x10x12x128xbf16> to vector<10x12x128xbf16>
    %68 = vector.shape_cast %65 : vector<10x12x128xbf16> to vector<1x10x12x128xbf16>
    tpu.vector_store %arg5[%c0_44, %c0_45, %c0_46, %c0_47], %68 {strides = array<i32>} : memref<1x10x12x128xbf16, #tpu.memory_space<vmem>>, vector<1x10x12x128xbf16>,
    return
  }
  func.func @transform_0(%arg0: i32, %arg1: i32) -> (i32, i32, i32, i32) {
    %c0_i32 = arith.constant 0 : i32
    %c0_i32_0 = arith.constant 0 : i32
    %c0_i32_1 = arith.constant 0 : i32
    %c0_i32_2 = arith.constant 0 : i32
    return %arg0, %c0_i32, %c0_i32_0, %c0_i32_1 : i32, i32, i32, i32
  }
  func.func @transform_1(%arg0: i32, %arg1: i32) -> (i32, i32) {
    %c0_i32 = arith.constant 0 : i32
    %c0_i32_0 = arith.constant 0 : i32
    return %c0_i32, %arg1 : i32, i32
  }
  func.func @transform_2(%arg0: i32, %arg1: i32) -> (i32, i32) {
    %c0_i32 = arith.constant 0 : i32
    %c0_i32_0 = arith.constant 0 : i32
    return %c0_i32, %arg1 : i32, i32
  }
  func.func @transform_3(%arg0: i32, %arg1: i32) -> (i32, i32, i32, i32) {
    %c0_i32 = arith.constant 0 : i32
    %c0_i32_0 = arith.constant 0 : i32
    %c0_i32_1 = arith.constant 0 : i32
    return %arg0, %c0_i32, %c0_i32_0, %arg1 : i32, i32, i32, i32
  }
}

</mosaic_0001>

<bundles_post_ra>
// kernel: tpu_custom_call.1
= control target key start
LH: loop header
LB: loop body
LE: loop exit
PB: predicated region body
PF: predicated region fallthrough
CT: control target
= control target key end

     0   :  { %8 = vsyncpa [#allocation4], 0  ;;  %s3300_s12 = smov 0   ;;  %s3302_s13 = smov 0   ;;  %s3955_s0 = inlined_call_operand.vmem [shape: bf16[2,10,12,64], index: 0, kind: input, shape index: {}]   ;;  %s3956_s1 = inlined_call_operand.hbm [shape: bf16[576,128], index: 1, kind: input, shape index: {}]   ;;  %s3957_s2 = inlined_call_operand.vmem [shape: f32[1,128], index: 2, kind: input, shape index: {}]   ;;  %s3958_s3 = inlined_call_operand.vmem [shape: bf16[2,10,12,128], index: 3, kind: output, shape index: {}]  }
   0x1   :  { %s3304_s14 = smov 0  }
   0x2 LB: > { %s2582_s15 = sadd.s32 4294967295, %s3274_s14   ;;  %s26_s16 = sadd.s32 1, %s3270_s13  ;;  %s3274_s14 = sphi %s3304_s14, %s14_s14   ;;  %s3270_s13 = sphi %s3302_s13, %s3986_s13   ;;  %s3266_s12 = sphi %s3300_s12, %s3985_s12  }
   0x3   : > { %p28_p0 = scmp.ge.s32.totalorder %s26_s16, 2  ;;  %p2584_p1 = scmp.ge.s32.totalorder %s3274_s14, 1 }
   0x4   : > { %p137_p2 = scmp.lt.s32.totalorder %s3274_s14, 3  ;;  %p3325_p4 = scmp.eq.s32.totalorder %s2582_s15, 0 }
   0x5   : > { %s3988_s16 = smov (%p28_p0, %s26_s16), 0  ;;  %s3276_s19 = smov [#allocation3]  }
   0x6   : > { %p3321_p3 = pnand %p2584_p1, %p137_p2  ;;  %s151_s20 = sshll.u32 %s3276_s19, 4  ;;  %s152_s20 = int_to_ptr.vmem [resolvable:$true] %s151_s20 }
   0x7   : > { %s3233_s21 = scalar_lea.vmem %s152_s20, 4608  ;;  %p3241_p11 = scmp.lt.s32.totalorder %s152_s20, %s152_s20 }
   0x8   : > { %p3152_p5 = pneg %p3321_p3  ;;  %p3234_p8 = scmp.ne.s32.totalorder %s152_s20, %s3233_s21 }
   0x9   : > { %p3242_p12 = scmp.lt.s32.totalorder %s3233_s21, %s3233_s21 }
   0xa   : > { %p3153_p6 = pnand %p3325_p4, %p3152_p5 }
   0xb   : > { %p3243_p13 = por %p3242_p12, %p3241_p11 }
   0xc   : > { %p3224_p7 = pneg %p3153_p6 }
   0xe   : > { %p3236_p9 = pnand %p3234_p8, %p3224_p7 }
  0x10   : > { %p3237_p10 = pneg %p3236_p9 }
  0x12   : > { %p3244_p0 = pnand %p3243_p13, %p3237_p10 }
  0x14   : > { %3247 = shalt.err (!%p3244_p0)
}
  0x15   : > { %s3277_s22 = smov 64   ;;  %s3278_s23 = smov 4  }
  0x16   : > { %3155 = dma.hbm_to_vmem [thread:$0]  (!%p3153_p6), %s3956_s1, 4608, %s152_s20, [#allocation4], %s3277_s22, %s3277_s22, %s3278_s23  }
  0x17   : > { %181 = sbr.rel (%p3321_p3) target bundleno = 453 (0x1c5), region = 32 }
  0x1c   : > { %3261 = dma.done.wait (%p3325_p4), [#allocation4], 4608  }
  0x1d   : > { %3263 = vsyncadd (%p3325_p4), [#allocation4], 4294962688  ;;  %p211_p1 = scmp.lt.s32.totalorder %s3266_s12, 1  ;;  %vm232_vm0 = vcmask 523264   ;;  %v3279_v0 = vmov 0.0   ;;  %v3186_v1 = vld [vmem:[#allocation3 + $0x38] sm:$0xff]  }
  0x1e   : > { %250 = vst.msk [vmem:[#allocation2 + $0x88] sm:$0xff] %vm232_vm0, %v3279_v0  ;;  %251 = vst.msk [vmem:[#allocation2 + $0x90] sm:$0xff] %vm232_vm0, %v3279_v0  ;;  %v3187_v2 = vld [vmem:[#allocation3 + $0x30] sm:$0xff]   ;;  %3139 = vmatprep.subr.bf16.mxu1 %v3186_v1  ;;  %2887 = vmatprep.subr.bf16.mxu0 %v3186_v1  ;;  %v3188_v3 = vld [vmem:[#allocation3 + $0x28] sm:$0xff]   ;;  %vm323_vm1 = vcmask 519168  }
  0x1f   : > { %233 = vst.msk [vmem:[#allocation2] sm:$0xff] %vm232_vm0, %v3279_v0  ;;  %234 = vst.msk [vmem:[#allocation2 + $0x8] sm:$0xff] %vm232_vm0, %v3279_v0  ;;  %s3990_s12 = smov (!%p211_p1, %s3266_s12), 1  ;;  %3143 = vmatpush3.bf16.msra.mxu1 %v3186_v1  ;;  %2888 = vmatpush3.bf16.msra.mxu0 %v3186_v1  ;;  %v3189_v18 = vld [vmem:[#allocation3 + $0x20] sm:$0xff]   ;;  %v3190_v26 = vld [vmem:[#allocation3 + $0x18] sm:$0xff]  }
  0x20   : > { %235 = vst.msk [vmem:[#allocation2 + $0x10] sm:$0xff] %vm232_vm0, %v3279_v0  ;;  %236 = vst.msk [vmem:[#allocation2 + $0x18] sm:$0xff] %vm232_vm0, %v3279_v0  ;;  %s3147_s26 = smul.u32 80, %s3990_s12  ;;  %3140 = vmatprep.subr.bf16.mxu1 %v3187_v2  ;;  %2889 = vmatprep.subr.bf16.mxu0 %v3187_v2  ;;  %v3191_v29 = vld [vmem:[#allocation3 + $0x58] sm:$0xff]   ;;  %v3192_v41 = vld [vmem:[#allocation3 + $0x10] sm:$0xff]  }
  0x21   : > { %237 = vst.msk [vmem:[#allocation2 + $0x20] sm:$0xff] %vm232_vm0, %v3279_v0  ;;  %238 = vst.msk [vmem:[#allocation2 + $0x28] sm:$0xff] %vm232_vm0, %v3279_v0  ;;  %v3193_v53 = vld [vmem:[#allocation3 + $0x50] sm:$0xff]   ;;  %v3194_v60 = vld [vmem:[#allocation3 + $0x8] sm:$0xff]  }
  0x22   : > { %239 = vst.msk [vmem:[#allocation2 + $0x30] sm:$0xff] %vm232_vm0, %v3279_v0  ;;  %240 = vst.msk [vmem:[#allocation2 + $0x38] sm:$0xff] %vm232_vm0, %v3279_v0  ;;  %s3402_s29 = scalar_lea.vmem %s3955_s0, %s3147_s26  ;;  %v3195_v1 = vld [vmem:[#allocation3 + $0x48] sm:$0xff]   ;;  %s3866_s7 = scalar_lea.vmem %s3958_s3, %s3147_s26 }
  0x23   : > { %241 = vst.msk [vmem:[#allocation2 + $0x40] sm:$0xff] %vm232_vm0, %v3279_v0  ;;  %242 = vst.msk [vmem:[#allocation2 + $0x48] sm:$0xff] %vm232_vm0, %v3279_v0  ;;  %v287_v4 = vld [vmem:[%s3402_s29 + $0x18] ss:$8 sps:$4 sm:$0xff]   ;;  %v288_v5 = vld [vmem:[%s3402_s29 + $0x1c] sm:$0x3]  ;;  %3144 = vmatpush3.bf16.msra.mxu1 %v3187_v2  ;;  %2890 = vmatpush3.bf16.msra.mxu0 %v3187_v2 }
  0x24   : > { %243 = vst.msk [vmem:[#allocation2 + $0x50] sm:$0xff] %vm232_vm0, %v3279_v0  ;;  %244 = vst.msk [vmem:[#allocation2 + $0x58] sm:$0xff] %vm232_vm0, %v3279_v0  ;;  %v290_v6 = vld [vmem:[%s3402_s29 + $0x24] sm:$0x3]  ;;  %v307_v7 = vunpack.c.l.bf16 %v287_v4  ;;  %v308_v8 = vunpack.c.l.bf16 %v288_v5  ;;  %v309_v9 = vunpack.c.h.bf16 %v287_v4  ;;  %v281_v13 = vld [vmem:[%s3402_s29] ss:$40 sps:$4 sm:$0xff]   ;;  %3141 = vmatprep.subr.bf16.mxu1 %v3188_v3  ;;  %2891 = vmatprep.subr.bf16.mxu0 %v3188_v3 }
  0x25   : > { %245 = vst.msk [vmem:[#allocation2 + $0x60] sm:$0xff] %vm232_vm0, %v3279_v0  ;;  %246 = vst.msk [vmem:[#allocation2 + $0x68] sm:$0xff] %vm232_vm0, %v3279_v0  ;;  %v310_v10 = vunpack.c.l.bf16 %v290_v6  ;;  %v282_v15 = vld [vmem:[%s3402_s29 + $0x4] sm:$0x3]  ;;  %v301_v16 = vunpack.c.l.bf16 %v281_v13  ;;  %v311_v17 = vunpack.c.h.bf16 %v281_v13  ;;  %v292_v20 = vld [vmem:[%s3402_s29 + $0x2c] sm:$0x3] }
  0x26   : > { %247 = vst.msk [vmem:[#allocation2 + $0x70] sm:$0xff] %vm232_vm0, %v3279_v0  ;;  %248 = vst.msk [vmem:[#allocation2 + $0x78] sm:$0xff] %vm232_vm0, %v3279_v0  ;;  %v381_v11 = vld [vmem:[#allocation2 + $0x8] sm:$0xff]  ;;  %v302_v19 = vunpack.c.l.bf16 %v282_v15  ;;  %v312_v22 = vunpack.c.l.bf16 %v292_v20  ;;  %v294_v23 = vld [vmem:[%s3402_s29 + $0x34] sm:$0x3] }
  0x27   : > { %249 = vst.msk [vmem:[#allocation2 + $0x80] sm:$0xff] %vm232_vm0, %v3279_v0  ;;  %252 = vst.msk [vmem:[#allocation2 + $0x98] sm:$0xff] %vm232_vm0, %v3279_v0  ;;  %v382_v12 = vld [vmem:[#allocation2 + $0x10] sm:$0xff]  ;;  %3145 = vmatpush3.bf16.msra.mxu1 %v3188_v3  ;;  %2892 = vmatpush3.bf16.msra.mxu0 %v3188_v3  ;;  %v314_v27 = vunpack.c.l.bf16 %v294_v23  ;;  %v284_v28 = vld [vmem:[%s3402_s29 + $0xc] sm:$0x3] }
  0x28   : > { %253 = vst.msk [vmem:[#allocation2 + $0xa0] sm:$0xff] %vm232_vm0, %v3279_v0  ;;  %254 = vst.msk [vmem:[#allocation2 + $0xa8] sm:$0xff] %vm232_vm0, %v3279_v0  ;;  %v401_v14 = vpack.c.bf16 %v382_v12, %v381_v11  ;;  %v293_v21 = vld [vmem:[%s3402_s29 + $0x8] ss:$40 sps:$4 sm:$0xff]   ;;  %3142 = vmatprep.subr.bf16.mxu1 %v3189_v18  ;;  %2893 = vmatprep.subr.bf16.mxu0 %v3189_v18  ;;  %v304_v30 = vunpack.c.l.bf16 %v284_v28  ;;  %v286_v32 = vld [vmem:[%s3402_s29 + $0x14] sm:$0x3] }
  0x29   : > { %255 = vst.msk [vmem:[#allocation2 + $0xb0] sm:$0xff] %vm232_vm0, %v3279_v0  ;;  %256 = vst.msk [vmem:[#allocation2 + $0xb8] sm:$0xff] %vm232_vm0, %v3279_v0  ;;  %v313_v24 = vunpack.c.h.bf16 %v293_v21  ;;  %v303_v25 = vunpack.c.l.bf16 %v293_v21  ;;  %v285_v31 = vld [vmem:[%s3402_s29 + $0x10] ss:$40 sps:$4 sm:$0xff]   ;;  %v306_v38 = vunpack.c.l.bf16 %v286_v32  ;;  %v296_v42 = vld [vmem:[%s3402_s29 + $0x3c] sm:$0x3] }
  0x2a   : > { %257 = vst.msk [vmem:[#allocation2 + $0xc0] sm:$0xff] %vm232_vm0, %v3279_v0  ;;  %258 = vst.msk [vmem:[#allocation2 + $0xc8] sm:$0xff] %vm232_vm0, %v3279_v0  ;;  %2895 = vmatprep.mubr.msk.bf16.mxu0 %vm232_vm0, %v401_v14  ;;  %v305_v33 = vunpack.c.l.bf16 %v285_v31  ;;  %v315_v34 = vunpack.c.h.bf16 %v285_v31  ;;  %v316_v46 = vunpack.c.l.bf16 %v296_v42  ;;  %v297_v47 = vld [vmem:[%s3402_s29 + $0x40] ss:$8 sps:$4 sm:$0xff]   ;;  %v298_v49 = vld [vmem:[%s3402_s29 + $0x44] sm:$0x3] }
  0x2b   : > { %259 = vst.msk [vmem:[#allocation2 + $0xd0] sm:$0xff] %vm232_vm0, %v3279_v0  ;;  %260 = vst.msk [vmem:[#allocation2 + $0xd8] sm:$0xff] %vm232_vm0, %v3279_v0  ;;  %3146 = vmatpush3.bf16.msra.mxu1 %v3189_v18  ;;  %2894 = vmatpush3.bf16.msra.mxu0 %v3189_v18  ;;  %v317_v50 = vunpack.c.l.bf16 %v297_v47  ;;  %v319_v51 = vunpack.c.h.bf16 %v297_v47  ;;  %v318_v54 = vunpack.c.l.bf16 %v298_v49  ;;  %v754_v2 = vld [vmem:[#allocation2 + $0x9] sm:$0xff]  ;;  %v755_v5 = vld [vmem:[#allocation2 + $0x11] sm:$0xff] }
  0x2c   : > { %261 = vst.msk [vmem:[#allocation2 + $0xe0] sm:$0xff] %vm232_vm0, %v3279_v0  ;;  %262 = vst.msk [vmem:[#allocation2 + $0xe8] sm:$0xff] %vm232_vm0, %v3279_v0  ;;  %2915 = vmatprep.subr.bf16.mxu1 %v3190_v26  ;;  %2943 = vmatprep.subr.bf16.mxu0 %v3191_v29  ;;  %v774_v11 = vpack.c.bf16 %v755_v5, %v754_v2  ;;  %v343_v14 = vld [vmem:[#allocation2 + $0x7] sm:$0xff]  ;;  %v344_v15 = vld [vmem:[#allocation2 + $0xf] sm:$0xff] }
  0x2d   : > { %263 = vst.msk [vmem:[#allocation2 + $0xf0] sm:$0xff] %vm232_vm0, %v3279_v0  ;;  %264 = vst.msk [vmem:[#allocation2 + $0xf8] sm:$0xff] %vm232_vm0, %v3279_v0  ;;  %v363_v23 = vpack.c.bf16 %v344_v15, %v343_v14  ;;  %v3202_v49 = vld [vmem:[#allocation3 + $0x68] sm:$0xff]  }
  0x2e   : > { %265 = vst.msk [vmem:[#allocation2 + $0x100] sm:$0xff] %vm232_vm0, %v3279_v0  ;;  %266 = vst.msk [vmem:[#allocation2 + $0x108] sm:$0xff] %vm232_vm0, %v3279_v0 }
  0x2f   : > { %267 = vst.msk [vmem:[#allocation2 + $0x110] sm:$0xff] %vm232_vm0, %v3279_v0  ;;  %268 = vst.msk [vmem:[#allocation2 + $0x118] sm:$0xff] %vm232_vm0, %v3279_v0 }
  0x30   : > { %269 = vst.msk [vmem:[#allocation2 + $0x120] sm:$0xff] %vm232_vm0, %v3279_v0  ;;  %270 = vst.msk [vmem:[#allocation2 + $0x128] sm:$0xff] %vm232_vm0, %v3279_v0 }
  0x31   : > { %271 = vst.msk [vmem:[#allocation2 + $0x130] sm:$0xff] %vm232_vm0, %v3279_v0  ;;  %272 = vst.msk [vmem:[#allocation2 + $0x138] sm:$0xff] %vm232_vm0, %v3279_v0 }
  0x32   : > { %273 = vst.msk [vmem:[#allocation2 + $0x140] sm:$0xff] %vm232_vm0, %v3279_v0  ;;  %274 = vst.msk [vmem:[#allocation2 + $0x148] sm:$0xff] %vm232_vm0, %v3279_v0 }
  0x33   : > { %275 = vst.msk [vmem:[#allocation2 + $0x150] sm:$0xff] %vm232_vm0, %v3279_v0  ;;  %276 = vst.msk [vmem:[#allocation2 + $0x158] sm:$0xff] %vm232_vm0, %v3279_v0 }
  0x34   : > { %277 = vst.msk [vmem:[#allocation2 + $0x160] sm:$0xff] %vm232_vm0, %v3279_v0  ;;  %278 = vst.msk [vmem:[#allocation2 + $0x168] sm:$0xff] %vm232_vm0, %v3279_v0 }
  0x35   : > { %279 = vst.msk [vmem:[#allocation2 + $0x170] sm:$0xff] %vm232_vm0, %v3279_v0  ;;  %280 = vst.msk [vmem:[#allocation2 + $0x178] sm:$0xff] %vm232_vm0, %v3279_v0 }
  0x36   : > { %329 = vst.msk [vmem:[#allocation2 + $0x88] sm:$0xff] %vm232_vm0, %v307_v7  ;;  %331 = vst.msk [vmem:[#allocation2 + $0xa8] sm:$0xff] %vm232_vm0, %v309_v9  ;;  %v3197_v7 = vld [vmem:[#allocation3] sm:$0xff]  }
  0x37   : > { %330 = vst.msk [vmem:[#allocation2 + $0x90] sm:$0xf] %vm323_vm1, %v308_v8  ;;  %332 = vst.msk [vmem:[#allocation2 + $0xb0] sm:$0xf] %vm323_vm1, %v310_v10  ;;  %v3196_v10 = vld [vmem:[#allocation3 + $0x40] sm:$0xff]  }
  0x38   : > { %322 = vst.msk [vmem:[#allocation2 + $0x28] sm:$0xff] %vm232_vm0, %v301_v16  ;;  %333 = vst.msk [vmem:[#allocation2 + $0xc8] sm:$0xff] %vm232_vm0, %v311_v17  ;;  %v3198_v16 = vld [vmem:[#allocation3 + $0x78] sm:$0xff]  }
  0x39   : > { %324 = vst.msk [vmem:[#allocation2 + $0x30] sm:$0xf] %vm323_vm1, %v302_v19  ;;  %334 = vst.msk [vmem:[#allocation2 + $0xd0] sm:$0xf] %vm323_vm1, %v312_v22  ;;  %v3199_v19 = vld [vmem:[#allocation3 + $0x98] sm:$0xff]  }
  0x3a   : > { %335 = vst.msk [vmem:[#allocation2 + $0xe8] sm:$0xff] %vm232_vm0, %v313_v24  ;;  %325 = vst.msk [vmem:[#allocation2 + $0x48] sm:$0xff] %vm232_vm0, %v303_v25 }
  0x3b   : > { %336 = vst.msk [vmem:[#allocation2 + $0xf0] sm:$0xf] %vm323_vm1, %v314_v27  ;;  %326 = vst.msk [vmem:[#allocation2 + $0x50] sm:$0xf] %vm323_vm1, %v304_v30  ;;  %v3201_v27 = vld [vmem:[#allocation3 + $0x90] sm:$0xff]  }
  0x3c   : > { %327 = vst.msk [vmem:[#allocation2 + $0x68] sm:$0xff] %vm232_vm0, %v305_v33  ;;  %337 = vst.msk [vmem:[#allocation2 + $0x108] sm:$0xff] %vm232_vm0, %v315_v34 }
  0x3d   : > { %v389_v35 = vld [vmem:[#allocation2 + $0x88] sm:$0xff]  ;;  %328 = vst.msk [vmem:[#allocation2 + $0x70] sm:$0xf] %vm323_vm1, %v306_v38  ;;  %338 = vst.msk [vmem:[#allocation2 + $0x110] sm:$0xf] %vm323_vm1, %v316_v46 }
  0x3e   : > { %v390_v36 = vld [vmem:[#allocation2 + $0x90] sm:$0xff]  ;;  %v391_v37 = vld [vmem:[#allocation2 + $0xa8] sm:$0xff]  ;;  %339 = vst.msk [vmem:[#allocation2 + $0x128] sm:$0xff] %vm232_vm0, %v317_v50  ;;  %341 = vst.msk [vmem:[#allocation2 + $0x148] sm:$0xff] %vm232_vm0, %v319_v51 }
  0x3f   : > { %v3428_v39 = vpack.c.bf16 %v390_v36, %v389_v35  ;;  %v392_v40 = vld [vmem:[#allocation2 + $0xb0] sm:$0xff]  ;;  %v383_v44 = vld [vmem:[#allocation2 + $0x28] sm:$0xff]  ;;  %340 = vst.msk [vmem:[#allocation2 + $0x130] sm:$0xf] %vm323_vm1, %v318_v54  ;;  %v3205_v51 = vld [vmem:[#allocation3 + $0x80] sm:$0xff]  }
  0x40   : > { %v3433_v43 = vpack.c.bf16 %v392_v40, %v391_v37  ;;  %v393_v45 = vld [vmem:[#allocation2 + $0xc8] sm:$0xff]  ;;  %v384_v48 = vld [vmem:[#allocation2 + $0x30] sm:$0xff] }
  0x41   : > { %2903 = vmatprep.mubr.msk.bf16.mxu1 %vm232_vm0, %v3428_v39  ;;  %v3442_v52 = vpack.c.bf16 %v384_v48, %v383_v44  ;;  %v394_v55 = vld [vmem:[#allocation2 + $0xd0] sm:$0xff]  ;;  %v395_v56 = vld [vmem:[#allocation2 + $0xe8] sm:$0xff] }
  0x42   : > { %2904 = vmatmul.mubr.msk.bf16.vlgmr.msra.gmra.mxu1 %vm232_vm0, %v3433_v43  ;;  %v385_v57 = vld [vmem:[#allocation2 + $0x48] sm:$0xff]  ;;  %v3449_v58 = vpack.c.bf16 %v394_v55, %v393_v45  ;;  %v396_v59 = vld [vmem:[#allocation2 + $0xf0] sm:$0xff]  ;;  %v3207_v55 = vld [vmem:[#allocation3 + $0xd8] sm:$0xff]  }
  0x43   : > { %2916 = vmatpush3.bf16.msra.mxu1 %v3190_v26  ;;  %2896 = vmatmul.mubr.msk.bf16.vlgmr.msra.gmra.mxu0 %vm232_vm0, %v3442_v52  ;;  %v386_v61 = vld [vmem:[#allocation2 + $0x50] sm:$0xff]  ;;  %v3454_v62 = vpack.c.bf16 %v396_v59, %v395_v56  ;;  %v387_v0 = vld [vmem:[#allocation2 + $0x68] sm:$0xff]  ;;  %v3204_v59 = vld [vmem:[#allocation3 + $0x60] sm:$0xff]  }
  0x44   : > { %2917 = vmatprep.subr.bf16.mxu1 %v3192_v41  ;;  %2944 = vmatpush3.bf16.msra.mxu0 %v3191_v29  ;;  %v3456_v63 = vpack.c.bf16 %v386_v61, %v385_v57  ;;  %v388_v3 = vld [vmem:[#allocation2 + $0x70] sm:$0xff]  ;;  %v397_v4 = vld [vmem:[#allocation2 + $0x108] sm:$0xff] }
  0x45   : > { %2907 = vmatprep.mubr.msk.bf16.mxu1 %vm232_vm0, %v3449_v58  ;;  %2945 = vmatprep.subr.bf16.mxu0 %v3193_v53  ;;  %v3460_v6 = vpack.c.bf16 %v388_v3, %v387_v0  ;;  %v398_v8 = vld [vmem:[#allocation2 + $0x110] sm:$0xff]  ;;  %v399_v12 = vld [vmem:[#allocation2 + $0x128] sm:$0xff] }
  0x46   : > { %2899 = vmatprep.mubr.msk.bf16.mxu0 %vm232_vm0, %v3456_v63  ;;  %v3464_v9 = vpack.c.bf16 %v398_v8, %v397_v4  ;;  %v400_v13 = vld [vmem:[#allocation2 + $0x130] sm:$0xff]  ;;  %v345_v26 = vld [vmem:[#allocation2 + $0x27] sm:$0xff]  ;;  %v3206_v8 = vld [vmem:[#allocation3 + $0xb8] sm:$0xff]  }
  0x47   : > { %2918 = vmatpush3.bf16.msra.mxu1 %v3192_v41  ;;  %v756_v17 = vld [vmem:[#allocation2 + $0x29] sm:$0xff]  ;;  %v757_v18 = vld [vmem:[#allocation2 + $0x31] sm:$0xff]  ;;  %v3470_v20 = vpack.c.bf16 %v400_v13, %v399_v12 }
  0x48   : > { %2919 = vmatprep.subr.bf16.mxu1 %v3194_v60  ;;  %2946 = vmatpush3.bf16.msra.mxu0 %v3193_v53  ;;  %v758_v21 = vld [vmem:[#allocation2 + $0x49] sm:$0xff]  ;;  %v759_v22 = vld [vmem:[#allocation2 + $0x51] sm:$0xff]  ;;  %v3473_v24 = vpack.c.bf16 %v757_v18, %v756_v17 }
  0x49   : > { %2947 = vmatprep.subr.bf16.mxu0 %v3195_v1  ;;  %v3475_v25 = vpack.c.bf16 %v759_v22, %v758_v21  ;;  %v346_v28 = vld [vmem:[#allocation2 + $0x2f] sm:$0xff]  ;;  %v347_v30 = vld [vmem:[#allocation2 + $0x47] sm:$0xff] }
  0x4a   : > { %2908 = vmatmul.mubr.msk.bf16.gmra.mxu1 %vm232_vm0, %v3454_v62  ;;  %v760_v29 = vld [vmem:[#allocation2 + $0x69] sm:$0xff]  ;;  %v761_v32 = vld [vmem:[#allocation2 + $0x71] sm:$0xff]  ;;  %v3484_v34 = vpack.c.bf16 %v346_v28, %v345_v26 }
  0x4b   : > { %2920 = vmatpush3.bf16.msra.mxu1 %v3194_v60  ;;  %2900 = vmatmul.mubr.msk.bf16.gmra.mxu0 %vm232_vm0, %v3460_v6  ;;  %v348_v31 = vld [vmem:[#allocation2 + $0x4f] sm:$0xff]  ;;  %v3488_v38 = vpack.c.bf16 %v761_v32, %v760_v29  ;;  %v349_v42 = vld [vmem:[#allocation2 + $0x67] sm:$0xff] }
  0x4c   : > { %2911 = vmatprep.mubr.msk.bf16.mxu1 %vm232_vm0, %v3464_v9  ;;  %2948 = vmatpush3.bf16.msra.mxu0 %v3195_v1  ;;  %v762_v33 = vld [vmem:[#allocation2 + $0x89] sm:$0xff]  ;;  %v763_v35 = vld [vmem:[#allocation2 + $0x91] sm:$0xff]  ;;  %v3486_v37 = vpack.c.bf16 %v348_v31, %v347_v30 }
  0x4d   : > { %2921 = vmatprep.subr.bf16.mxu1 %v3197_v7  ;;  %2949 = vmatprep.subr.bf16.mxu0 %v3196_v10  ;;  %v3203_v36 = vld [vmem:[#allocation3 + $0x88] sm:$0xff]   ;;  %v3200_v40 = vld [vmem:[#allocation3 + $0x70] sm:$0xff]   ;;  %v3490_v41 = vpack.c.bf16 %v763_v35, %v762_v33  ;;  %v3215_v35 = vld [vmem:[#allocation3 + $0x118] sm:$0xff]  }
  0x4e   : > { %2951 = vmatprep.mubr.msk.bf16.mxu0 %vm232_vm0, %v774_v11  ;;  %v350_v44 = vld [vmem:[#allocation2 + $0x6f] sm:$0xff]  ;;  %v351_v45 = vld [vmem:[#allocation2 + $0x87] sm:$0xff] }
  0x4f   : > { %2922 = vmatpush3.bf16.msra.mxu1 %v3197_v7  ;;  %v764_v46 = vld [vmem:[#allocation2 + $0xa9] sm:$0xff]  ;;  %v765_v47 = vld [vmem:[#allocation2 + $0xb1] sm:$0xff]  ;;  %v3500_v54 = vpack.c.bf16 %v350_v44, %v349_v42 }
  0x50   : > { %2971 = vmatprep.subr.bf16.mxu1 %v3198_v16  ;;  %2950 = vmatpush3.bf16.msra.mxu0 %v3196_v10  ;;  %v352_v48 = vld [vmem:[#allocation2 + $0x8f] sm:$0xff]  ;;  %v3504_v57 = vpack.c.bf16 %v765_v47, %v764_v46  ;;  %v353_v60 = vld [vmem:[#allocation2 + $0xa7] sm:$0xff] }
  0x51   : > { %2999 = vmatprep.subr.bf16.mxu0 %v3199_v19  ;;  %v766_v50 = vld [vmem:[#allocation2 + $0xc9] sm:$0xff]  ;;  %v767_v53 = vld [vmem:[#allocation2 + $0xd1] sm:$0xff]  ;;  %v3502_v56 = vpack.c.bf16 %v352_v48, %v351_v45 }
  0x52   : > { %2912 = vmatmul.mubr.msk.bf16.gmra.mxu1 %vm232_vm0, %v3470_v20  ;;  %v3506_v61 = vpack.c.bf16 %v767_v53, %v766_v50  ;;  %v354_v0 = vld [vmem:[#allocation2 + $0xaf] sm:$0xff]  ;;  %v300_v1 = vld [vmem:[%s3402_s29 + $0x4c] sm:$0x3]  ;;  %v3220_v50 = vld [vmem:[#allocation3 + $0xe0] sm:$0xff]  }
  0x53   : > { %2923 = vmatprep.mubr.msk.bf16.mxu1 %vm232_vm0, %v363_v23  ;;  %2952 = vmatmul.mubr.msk.bf16.vlgmr.msra.gmra.mxu0 %vm232_vm0, %v3473_v24  ;;  %v768_v2 = vld [vmem:[#allocation2 + $0xe9] sm:$0xff]  ;;  %v769_v3 = vld [vmem:[#allocation2 + $0xf1] sm:$0xff]  ;;  %v320_v5 = vunpack.c.l.bf16 %v300_v1  ;;  %v3518_v11 = vpack.c.bf16 %v354_v0, %v353_v60 }
  0x54   : > { %3000 = vmatpush3.bf16.msra.mxu0 %v3199_v19  ;;  %2955 = vmatprep.mubr.msk.bf16.mxu0 %vm232_vm0, %v3475_v25  ;;  %v355_v4 = vld [vmem:[#allocation2 + $0xc7] sm:$0xff]  ;;  %v356_v7 = vld [vmem:[#allocation2 + $0xcf] sm:$0xff]  ;;  %v3522_v14 = vpack.c.bf16 %v769_v3, %v768_v2 }
  0x55   : > { %3001 = vmatprep.subr.bf16.mxu0 %v3201_v27  ;;  %v770_v10 = vld [vmem:[#allocation2 + $0x109] sm:$0xff]  ;;  %342 = vst.msk [vmem:[#allocation2 + $0x150] sm:$0xf] %vm323_vm1, %v320_v5  ;;  %v771_v12 = vld [vmem:[#allocation2 + $0x111] sm:$0xff]  ;;  %v3520_v13 = vpack.c.bf16 %v356_v7, %v355_v4 }
  0x56   : > { %v3524_v15 = vpack.c.bf16 %v771_v12, %v770_v10  ;;  %v358_v17 = vld [vmem:[#allocation2 + $0xef] sm:$0xff]  ;;  %v359_v19 = vld [vmem:[#allocation2 + $0x107] sm:$0xff] }
  0x57   : > { %v772_v18 = vld [vmem:[#allocation2 + $0x129] sm:$0xff]  ;;  %v773_v22 = vld [vmem:[#allocation2 + $0x131] sm:$0xff] }
  0x58   : > { %3002 = vmatpush3.bf16.msra.mxu0 %v3201_v27  ;;  %v360_v21 = vld [vmem:[#allocation2 + $0x10f] sm:$0xff]  ;;  %v3538_v27 = vpack.c.bf16 %v773_v22, %v772_v18  ;;  %v361_v28 = vld [vmem:[#allocation2 + $0x127] sm:$0xff] }
  0x59   : > { %3003 = vmatprep.subr.bf16.mxu0 %v3203_v36  ;;  %v3536_v26 = vpack.c.bf16 %v360_v21, %v359_v19  ;;  %v362_v29 = vld [vmem:[#allocation2 + $0x12f] sm:$0xff]  ;;  %v998_v44 = vld [vmem:[#allocation2 + $0x147] sm:$0xff] }
  0x5a   : > { %2924 = vmatmul.mubr.msk.bf16.vlgmr.msra.gmra.mxu1 %vm232_vm0, %v3484_v34  ;;  %v3548_v30 = vpack.c.bf16 %v362_v29, %v361_v28  ;;  %v3209_v31 = vld [vmem:[#allocation3 + $0xd0] sm:$0xff]   ;;  %v3211_v32 = vld [vmem:[#allocation3 + $0xc8] sm:$0xff]  }
  0x5b   : > { %2972 = vmatpush3.bf16.msra.mxu1 %v3198_v16  ;;  %2927 = vmatprep.mubr.msk.bf16.mxu1 %vm232_vm0, %v3486_v37  ;;  %v357_v16 = vld [vmem:[#allocation2 + $0xe7] sm:$0xff]  ;;  %v3208_v33 = vld [vmem:[#allocation3 + $0xb0] sm:$0xff]  }
  0x5c   : > { %2956 = vmatmul.mubr.msk.bf16.gmra.mxu0 %vm232_vm0, %v3488_v38  ;;  %2973 = vmatprep.subr.bf16.mxu1 %v3200_v40  ;;  %v3534_v23 = vpack.c.bf16 %v358_v17, %v357_v16  ;;  %v999_v45 = vld [vmem:[#allocation2 + $0x14f] sm:$0xff] }
  0x5d   : > { %2959 = vmatprep.mubr.msk.bf16.mxu0 %vm232_vm0, %v3490_v41  ;;  %3004 = vmatpush3.bf16.msra.mxu0 %v3203_v36  ;;  %v3212_v36 = vld [vmem:[#allocation3 + $0xa0] sm:$0xff]   ;;  %v1009_v46 = vpack.c.bf16 %v999_v45, %v998_v44  ;;  %v3217_v47 = vld [vmem:[#allocation3 + $0x110] sm:$0xff]   ;;  %v3219_v48 = vld [vmem:[#allocation3 + $0x108] sm:$0xff]  }
  0x5e   : > { %3005 = vmatprep.subr.bf16.mxu0 %v3205_v51  ;;  %v1675_v53 = vld [vmem:[#allocation2 + $0x16f] sm:$0xff] }
  0x5f   : > { %2974 = vmatpush3.bf16.msra.mxu1 %v3200_v40  ;;  %v1224_v40 = vld [vmem:[#allocation2 + $0x150] sm:$0xff]  ;;  %v1885_v60 = vld [vmem:[#allocation2 + $0x88] sm:$0xff] }
  0x60   : > { %2975 = vmatprep.subr.bf16.mxu1 %v3202_v49  ;;  %v1886_v0 = vld [vmem:[#allocation2 + $0x90] sm:$0xff] }
  0x61   : > { %3006 = vmatpush3.bf16.msra.mxu0 %v3205_v51  ;;  %v1674_v51 = vld [vmem:[#allocation2 + $0x167] sm:$0xff]  ;;  %v1903_v1 = vpack.c.bf16 %v1886_v0, %v1885_v60  ;;  %v1888_v2 = vld [vmem:[#allocation2 + $0xb0] sm:$0xff] }
  0x62   : > { %2928 = vmatmul.mubr.msk.bf16.gmra.mxu1 %vm232_vm0, %v3500_v54  ;;  %3055 = vmatprep.subr.bf16.mxu0 %v3207_v55 }
  0x63   : > { %2931 = vmatprep.mubr.msk.bf16.mxu1 %vm232_vm0, %v3502_v56  ;;  %2976 = vmatpush3.bf16.msra.mxu1 %v3202_v49  ;;  %v3216_v49 = vld [vmem:[#allocation3 + $0xf0] sm:$0xff]  }
  0x64   : > { %2960 = vmatmul.mubr.msk.bf16.gmra.mxu0 %vm232_vm0, %v3504_v57  ;;  %2977 = vmatprep.subr.bf16.mxu1 %v3204_v59 }
  0x65   : > { %2963 = vmatprep.mubr.msk.bf16.mxu0 %vm232_vm0, %v3506_v61 }
  0x67   : > { %2978 = vmatpush3.bf16.msra.mxu1 %v3204_v59 }
  0x68   : > { %3027 = vmatprep.subr.bf16.mxu1 %v3206_v8 }
  0x6a   : > { %2932 = vmatmul.mubr.msk.bf16.gmra.mxu1 %vm232_vm0, %v3518_v11 }
  0x6b   : > { %2935 = vmatprep.mubr.msk.bf16.mxu1 %vm232_vm0, %v3520_v13 }
  0x6c   : > { %2964 = vmatmul.mubr.msk.bf16.gmra.mxu0 %vm232_vm0, %v3522_v14 }
  0x6d   : > { %2967 = vmatprep.mubr.msk.bf16.mxu0 %vm232_vm0, %v3524_v15 }
  0x72   : > { %2936 = vmatmul.mubr.msk.bf16.gmra.mxu1 %vm232_vm0, %v3534_v23 }
  0x73   : > { %2939 = vmatprep.mubr.msk.bf16.mxu1 %vm232_vm0, %v3536_v26 }
  0x74   : > { %2968 = vmatmul.mubr.msk.bf16.gmra.mxu0 %vm232_vm0, %v3538_v27 }
  0x75   : > { %3007 = vmatprep.mubr.msk.bf16.mxu0 %vm232_vm0, %v3442_v52  ;;  %v3213_v52 = vld [vmem:[#allocation3 + $0xc0] sm:$0xff]  }
  0x7a   : > { %2940 = vmatmul.mubr.msk.bf16.gmra.mxu1 %vm232_vm0, %v3548_v30 }
  0x7b   : > { %2979 = vmatprep.mubr.msk.bf16.mxu1 %vm232_vm0, %v3484_v34  ;;  %v3210_v34 = vld [vmem:[#allocation3 + $0xa8] sm:$0xff]  }
  0x7c   : > { %3008 = vmatmul.mubr.msk.bf16.vlgmr.msra.gmra.mxu0 %vm232_vm0, %v3456_v63 }
  0x7d   : > { %3056 = vmatpush3.bf16.msra.mxu0 %v3207_v55  ;;  %3011 = vmatprep.mubr.msk.bf16.mxu0 %vm232_vm0, %v3460_v6  ;;  %v1448_v55 = vld [vmem:[#allocation2 + $0x149] sm:$0xff] }
  0x7e   : > { %3057 = vmatprep.subr.bf16.mxu0 %v3209_v31 }
  0x81   : > { %3058 = vmatpush3.bf16.msra.mxu0 %v3209_v31 }
  0x82   : > { %2980 = vmatmul.mubr.msk.bf16.vlgmr.msra.gmra.mxu1 %vm232_vm0, %v3486_v37  ;;  %3059 = vmatprep.subr.bf16.mxu0 %v3211_v32 }
  0x83   : > { %3028 = vmatpush3.bf16.msra.mxu1 %v3206_v8  ;;  %2983 = vmatprep.mubr.msk.bf16.mxu1 %vm232_vm0, %v3500_v54 }
  0x84   : > { %3012 = vmatmul.mubr.msk.bf16.gmra.mxu0 %vm232_vm0, %v3428_v39  ;;  %3029 = vmatprep.subr.bf16.mxu1 %v3208_v33  ;;  %v3214_v39 = vld [vmem:[#allocation3 + $0xf8] sm:$0xff]  }
  0x85   : > { %3015 = vmatprep.mubr.msk.bf16.mxu0 %vm232_vm0, %v3433_v43  ;;  %3060 = vmatpush3.bf16.msra.mxu0 %v3211_v32  ;;  %v1223_v43 = vld [vmem:[#allocation2 + $0x148] sm:$0xff] }
  0x86   : > { %3061 = vmatprep.subr.bf16.mxu0 %v3213_v52  ;;  %v3582_v42 = vpack.c.bf16 %v1224_v40, %v1223_v43 }
  0x87   : > { %3030 = vmatpush3.bf16.msra.mxu1 %v3208_v33 }
  0x88   : > { %3031 = vmatprep.subr.bf16.mxu1 %v3210_v34 }
  0x89   : > { %3062 = vmatpush3.bf16.msra.mxu0 %v3213_v52 }
  0x8a   : > { %2984 = vmatmul.mubr.msk.bf16.gmra.mxu1 %vm232_vm0, %v3502_v56  ;;  %3111 = vmatprep.subr.bf16.mxu0 %v3215_v35 }
  0x8b   : > { %2987 = vmatprep.mubr.msk.bf16.mxu1 %vm232_vm0, %v3518_v11  ;;  %3032 = vmatpush3.bf16.msra.mxu1 %v3210_v34 }
  0x8c   : > { %3016 = vmatmul.mubr.msk.bf16.gmra.mxu0 %vm232_vm0, %v3449_v58  ;;  %3033 = vmatprep.subr.bf16.mxu1 %v3212_v36 }
  0x8d   : > { %3019 = vmatprep.mubr.msk.bf16.mxu0 %vm232_vm0, %v3454_v62 }
  0x8f   : > { %3034 = vmatpush3.bf16.msra.mxu1 %v3212_v36 }
  0x90   : > { %3083 = vmatprep.subr.bf16.mxu1 %v3214_v39 }
  0x92   : > { %2988 = vmatmul.mubr.msk.bf16.gmra.mxu1 %vm232_vm0, %v3520_v13 }
  0x93   : > { %2991 = vmatprep.mubr.msk.bf16.mxu1 %vm232_vm0, %v3534_v23 }
  0x94   : > { %3020 = vmatmul.mubr.msk.bf16.gmra.mxu0 %vm232_vm0, %v3464_v9 }
  0x95   : > { %3023 = vmatprep.mubr.msk.bf16.mxu0 %vm232_vm0, %v3470_v20 }
  0x9a   : > { %2992 = vmatmul.mubr.msk.bf16.gmra.mxu1 %vm232_vm0, %v3536_v26 }
  0x9b   : > { %2995 = vmatprep.mubr.msk.bf16.mxu1 %vm232_vm0, %v3548_v30 }
  0x9c   : > { %3024 = vmatmul.mubr.msk.bf16.gmra.mxu0 %vm232_vm0, %v3582_v42 }
  0x9d   : > { %3063 = vmatprep.mubr.msk.bf16.mxu0 %vm232_vm0, %v3486_v37  ;;  %v3221_v37 = vld [vmem:[#allocation3 + $0x100] sm:$0xff]  }
  0xa2   : > { %2996 = vmatmul.mubr.msk.bf16.gmra.mxu1 %vm232_vm0, %v1009_v46 }
  0xa3   : > { %3035 = vmatprep.mubr.msk.bf16.mxu1 %vm232_vm0, %v3473_v24  ;;  %v3218_v24 = vld [vmem:[#allocation3 + $0xe8] sm:$0xff]  }
  0xa4   : > { %3064 = vmatmul.mubr.msk.bf16.vlgmr.msra.gmra.mxu0 %vm232_vm0, %v3500_v54  ;;  %v1685_v54 = vpack.c.bf16 %v1675_v53, %v1674_v51 }
  0xa5   : > { %3112 = vmatpush3.bf16.msra.mxu0 %v3215_v35  ;;  %3067 = vmatprep.mubr.msk.bf16.mxu0 %vm232_vm0, %v3502_v56  ;;  %v1449_v56 = vld [vmem:[#allocation2 + $0x151] sm:$0xff] }
  0xa6   : > { %3113 = vmatprep.subr.bf16.mxu0 %v3217_v47  ;;  %v1459_v59 = vpack.c.bf16 %v1449_v56, %v1448_v55 }
  0xa9   : > { %3114 = vmatpush3.bf16.msra.mxu0 %v3217_v47 }
  0xaa   : > { %3036 = vmatmul.mubr.msk.bf16.vlgmr.msra.gmra.mxu1 %vm232_vm0, %v3475_v25  ;;  %3115 = vmatprep.subr.bf16.mxu0 %v3219_v48 }
  0xab   : > { %3084 = vmatpush3.bf16.msra.mxu1 %v3214_v39  ;;  %3039 = vmatprep.mubr.msk.bf16.mxu1 %vm232_vm0, %v3488_v38 }
  0xac   : > { %3068 = vmatmul.mubr.msk.bf16.gmra.mxu0 %vm232_vm0, %v3518_v11  ;;  %3085 = vmatprep.subr.bf16.mxu1 %v3216_v49 }
  0xad   : > { %3071 = vmatprep.mubr.msk.bf16.mxu0 %vm232_vm0, %v3520_v13  ;;  %3116 = vmatpush3.bf16.msra.mxu0 %v3219_v48 }
  0xae   : > { %3117 = vmatprep.subr.bf16.mxu0 %v3221_v37 }
  0xaf   : > { %3086 = vmatpush3.bf16.msra.mxu1 %v3216_v49 }
  0xb0   : > { %3087 = vmatprep.subr.bf16.mxu1 %v3218_v24 }
  0xb1   : > { %3118 = vmatpush3.bf16.msra.mxu0 %v3221_v37 }
  0xb2   : > { %3040 = vmatmul.mubr.msk.bf16.gmra.mxu1 %vm232_vm0, %v3490_v41 }
  0xb3   : > { %3043 = vmatprep.mubr.msk.bf16.mxu1 %vm232_vm0, %v3504_v57  ;;  %3088 = vmatpush3.bf16.msra.mxu1 %v3218_v24 }
  0xb4   : > { %3072 = vmatmul.mubr.msk.bf16.gmra.mxu0 %vm232_vm0, %v3534_v23  ;;  %3089 = vmatprep.subr.bf16.mxu1 %v3220_v50 }
  0xb5   : > { %3075 = vmatprep.mubr.msk.bf16.mxu0 %vm232_vm0, %v3536_v26 }
  0xb7   : > { %3090 = vmatpush3.bf16.msra.mxu1 %v3220_v50 }
  0xba   : > { %3044 = vmatmul.mubr.msk.bf16.gmra.mxu1 %vm232_vm0, %v3506_v61 }
  0xbb   : > { %3047 = vmatprep.mubr.msk.bf16.mxu1 %vm232_vm0, %v3522_v14 }
  0xbc   : > { %3076 = vmatmul.mubr.msk.bf16.gmra.mxu0 %vm232_vm0, %v3548_v30 }
  0xbd   : > { %3079 = vmatprep.mubr.msk.bf16.mxu0 %vm232_vm0, %v1009_v46 }
  0xc2   : > { %3048 = vmatmul.mubr.msk.bf16.gmra.mxu1 %vm232_vm0, %v3524_v15 }
  0xc3   : > { %3051 = vmatprep.mubr.msk.bf16.mxu1 %vm232_vm0, %v3538_v27 }
  0xc4   : > { %3080 = vmatmul.mubr.msk.bf16.gmra.mxu0 %vm232_vm0, %v1685_v54 }
  0xc5   : > { %3119 = vmatprep.mubr.msk.bf16.mxu0 %vm232_vm0, %v3475_v25  ;;  %v1887_v25 = vld [vmem:[#allocation2 + $0xa8] sm:$0xff] }
  0xca   : > { %3052 = vmatmul.mubr.msk.bf16.gmra.mxu1 %vm232_vm0, %v1459_v59 }
  0xcb   : > { %3091 = vmatprep.mubr.msk.bf16.mxu1 %vm232_vm0, %v3456_v63  ;;  %v1904_v63 = vpack.c.bf16 %v1888_v2, %v1887_v25 }
  0xcc   : > { %3120 = vmatmul.mubr.msk.bf16.vlgmr.msra.gmra.mxu0 %vm232_vm0, %v3488_v38  ;;  %v2125_v38 = vld [vmem:[#allocation2 + $0x171] sm:$0xff] }
  0xcd   : > { %3123 = vmatprep.mubr.msk.bf16.mxu0 %vm232_vm0, %v3490_v41  ;;  %v1899_v41 = vld [vmem:[#allocation2 + $0x168] sm:$0xff] }
  0xd2   : > { %3092 = vmatmul.mubr.msk.bf16.vlgmr.msra.gmra.mxu1 %vm232_vm0, %v3460_v6  ;;  %v2124_v6 = vld [vmem:[#allocation2 + $0x169] sm:$0xff] }
  0xd3   : > { %3095 = vmatprep.mubr.msk.bf16.mxu1 %vm232_vm0, %v1903_v1 }
  0xd4   : > { %3124 = vmatmul.mubr.msk.bf16.gmra.mxu0 %vm232_vm0, %v3504_v57  ;;  %v1900_v57 = vld [vmem:[#allocation2 + $0x170] sm:$0xff] }
  0xd5   : > { %3127 = vmatprep.mubr.msk.bf16.mxu0 %vm232_vm0, %v3506_v61 }
  0xda   : > { %3096 = vmatmul.mubr.msk.bf16.gmra.mxu1 %vm232_vm0, %v1904_v63 }
  0xdb   : > { %3099 = vmatprep.mubr.msk.bf16.mxu1 %vm232_vm0, %v3449_v58  ;;  %v2135_v58 = vpack.c.bf16 %v2125_v38, %v2124_v6 }
  0xdc   : > { %3128 = vmatmul.mubr.msk.bf16.gmra.mxu0 %vm232_vm0, %v3522_v14 }
  0xdd   : > { %3131 = vmatprep.mubr.msk.bf16.mxu0 %vm232_vm0, %v3524_v15 }
  0xe2   : > { %3100 = vmatmul.mubr.msk.bf16.gmra.mxu1 %vm232_vm0, %v3454_v62  ;;  %v1910_v62 = vpack.c.bf16 %v1900_v57, %v1899_v41 }
  0xe3   : > { %3103 = vmatprep.mubr.msk.bf16.mxu1 %vm232_vm0, %v3464_v9 }
  0xe4   : > { %3132 = vmatmul.mubr.msk.bf16.gmra.mxu0 %vm232_vm0, %v3538_v27 }
  0xe5   : > { %3135 = vmatprep.mubr.msk.bf16.mxu0 %vm232_vm0, %v1459_v59 }
  0xea   : > { %3104 = vmatmul.mubr.msk.bf16.gmra.mxu1 %vm232_vm0, %v3470_v20 }
  0xeb   : > { %3107 = vmatprep.mubr.msk.bf16.mxu1 %vm232_vm0, %v3582_v42 }
  0xec   : > { %3136 = vmatmul.mubr.msk.bf16.gmra.mxu0 %vm232_vm0, %v2135_v58 }
  0xf2   : > { %3108 = vmatmul.mubr.msk.bf16.gmra.mxu1 %vm232_vm0, %v1910_v62 }
 0x102   : > { %v2905_v9 = vpop.f32.mrf.mxu1 }
 0x103   : > { %v2897_v3 = vpop.f32.mrf.mxu0 }
 0x104   : > { %v540_v61 = vpop.f32.mrf.mxu1 }
 0x105   : > { %v508_v5 = vpop.f32.mrf.mxu0 }
 0x106   : > { %v2906_v4 = vpop.f32.mrf.mxu1 }
 0x107   : > { %v2898_v8 = vpop.f32.mrf.mxu0 }
 0x108   : > { %v3663_v7 = vpop.f32.mrf.mxu1 }
 0x109   : > { %v511_v20 = vpop.f32.mrf.mxu0 }
 0x10a   : > { %v3665_v10 = vpop.f32.mrf.mxu1 }
 0x10b   : > { %v2901_v12 = vpop.f32.mrf.mxu0 }
 0x10c   : > { %v3667_v11 = vpop.f32.mrf.mxu1 }
 0x10d   : > { %v524_v14 = vpop.f32.mrf.mxu0 }
 0x10e   : > { %v3669_v13 = vpop.f32.mrf.mxu1 }
 0x10f   : > { %v2902_v16 = vpop.f32.mrf.mxu0 }
 0x110   : > { %v3671_v15 = vpop.f32.mrf.mxu1 }
 0x111   : > { %v527_v18 = vpop.f32.mrf.mxu0 }
 0x112   : > { %v3673_v17 = vpop.f32.mrf.mxu1 }
 0x113   : > { %v2953_v21 = vpop.f32.mrf.mxu0 }
 0x114   : > { %v3675_v19 = vpop.f32.mrf.mxu1 }
 0x115   : > { %v880_v23 = vpop.f32.mrf.mxu0 }
 0x116   : > { %v3677_v22 = vpop.f32.mrf.mxu1 }
 0x117   : > { %v2954_v27 = vpop.f32.mrf.mxu0 }
 0x118   : > { %v3679_v26 = vpop.f32.mrf.mxu1 }
 0x119   : > { %v883_v29 = vpop.f32.mrf.mxu0 }
 0x11a   : > { %v2925_v28 = vpop.f32.mrf.mxu1 }
 0x11b   : > { %v684_v30 = vadd.f32 %v2925_v28, %v2897_v3 }
 0x11c   : > { %v675_v31 = vpop.f32.mrf.mxu1  ;;  %v2957_v32 = vpop.f32.mrf.mxu0 }
 0x11d   : > { %v676_v33 = vadd.f32 %v675_v31, %v508_v5  ;;  %v3681_v52 = vadd.f32 %v2953_v21, %v684_v30 }
 0x11e   : > { %v2926_v34 = vpop.f32.mrf.mxu1  ;;  %v896_v35 = vpop.f32.mrf.mxu0 }
 0x11f   : > { %v687_v36 = vadd.f32 %v2926_v34, %v2898_v8  ;;  %v3683_v39 = vadd.f32 %v880_v23, %v676_v33 }
 0x120   : > { %v678_v43 = vpop.f32.mrf.mxu1  ;;  %v2958_v40 = vpop.f32.mrf.mxu0 }
 0x121   : > { %v679_v42 = vadd.f32 %v678_v43, %v511_v20  ;;  %v3685_v44 = vadd.f32 %v2954_v27, %v687_v36 }
 0x122   : > { %v2929_v45 = vpop.f32.mrf.mxu1  ;;  %v899_v46 = vpop.f32.mrf.mxu0 }
 0x123   : > { %v700_v47 = vadd.f32 %v2929_v45, %v2901_v12  ;;  %v3687_v48 = vadd.f32 %v883_v29, %v679_v42 }
 0x124   : > { %v691_v49 = vpop.f32.mrf.mxu1  ;;  %v2961_v37 = vpop.f32.mrf.mxu0 }
 0x125   : > { %v692_v24 = vadd.f32 %v691_v49, %v524_v14  ;;  %v3689_v50 = vadd.f32 %v2957_v32, %v700_v47 }
 0x126   : > { %v2930_v51 = vpop.f32.mrf.mxu1  ;;  %v912_v53 = vpop.f32.mrf.mxu0 }
 0x127   : > { %v703_v54 = vadd.f32 %v2930_v51, %v2902_v16  ;;  %v3691_v55 = vadd.f32 %v896_v35, %v692_v24 }
 0x128   : > { %v694_v56 = vpop.f32.mrf.mxu1  ;;  %v2962_v59 = vpop.f32.mrf.mxu0 }
 0x129   : > { %v695_v60 = vadd.f32 %v694_v56, %v527_v18  ;;  %v3693_v0 = vadd.f32 %v2958_v40, %v703_v54 }
 0x12a   : > { %v2933_v1 = vpop.f32.mrf.mxu1  ;;  %v915_v25 = vpop.f32.mrf.mxu0 }
 0x12b   : > { %v716_v2 = vadd.f32 %v2933_v1, %v2905_v9  ;;  %v3695_v63 = vadd.f32 %v899_v46, %v695_v60 }
 0x12c   : > { %v707_v6 = vpop.f32.mrf.mxu1  ;;  %v2965_v38 = vpop.f32.mrf.mxu0 }
 0x12d   : > { %v708_v58 = vadd.f32 %v707_v6, %v540_v61  ;;  %v3697_v41 = vadd.f32 %v2961_v37, %v716_v2 }
 0x12e   : > { %v2934_v57 = vpop.f32.mrf.mxu1  ;;  %v928_v62 = vpop.f32.mrf.mxu0 }
 0x12f   : > { %v719_v3 = vadd.f32 %v2934_v57, %v2906_v4  ;;  %v3699_v5 = vadd.f32 %v912_v53, %v708_v58 }
 0x130   : > { %v710_v8 = vpop.f32.mrf.mxu1  ;;  %v2966_v20 = vpop.f32.mrf.mxu0 }
 0x131   : > { %v711_v12 = vadd.f32 %v710_v8, %v3663_v7  ;;  %v3702_v14 = vadd.f32 %v2962_v59, %v719_v3 }
 0x132   : > { %v2937_v16 = vpop.f32.mrf.mxu1  ;;  %v931_v9 = vpop.f32.mrf.mxu0 }
 0x133   : > { %v732_v18 = vadd.f32 %v2937_v16, %v3665_v10  ;;  %v3705_v21 = vadd.f32 %v915_v25, %v711_v12 }
 0x134   : > { %v723_v61 = vpop.f32.mrf.mxu1  ;;  %v2969_v23 = vpop.f32.mrf.mxu0 }
 0x135   : > { %v724_v27 = vadd.f32 %v723_v61, %v3667_v11  ;;  %v3708_v28 = vadd.f32 %v2965_v38, %v732_v18 }
 0x136   : > { %v2938_v4 = vpop.f32.mrf.mxu1  ;;  %v944_v29 = vpop.f32.mrf.mxu0 }
 0x137   : > { %v735_v30 = vadd.f32 %v2938_v4, %v3669_v13  ;;  %v3711_v31 = vadd.f32 %v928_v62, %v724_v27 }
 0x138   : > { %v726_v7 = vpop.f32.mrf.mxu1  ;;  %v2970_v32 = vpop.f32.mrf.mxu0 }
 0x139   : > { %v727_v33 = vadd.f32 %v726_v7, %v3671_v15  ;;  %v3714_v34 = vadd.f32 %v2966_v20, %v735_v30 }
 0x13a   : > { %v2941_v10 = vpop.f32.mrf.mxu1  ;;  %v947_v35 = vpop.f32.mrf.mxu0 }
 0x13b   : > { %v748_v36 = vadd.f32 %v2941_v10, %v3673_v17  ;;  %v3717_v43 = vadd.f32 %v931_v9, %v727_v33 }
 0x13c   : > { %v739_v11 = vpop.f32.mrf.mxu1  ;;  %v3009_v40 = vpop.f32.mrf.mxu0 }
 0x13d   : > { %v740_v42 = vadd.f32 %v739_v11, %v3675_v19  ;;  %v3720_v45 = vadd.f32 %v2969_v23, %v748_v36 }
 0x13e   : > { %v2942_v13 = vpop.f32.mrf.mxu1  ;;  %v1331_v46 = vpop.f32.mrf.mxu0 }
 0x13f   : > { %v751_v47 = vadd.f32 %v2942_v13, %v3677_v22  ;;  %v3723_v49 = vadd.f32 %v944_v29, %v740_v42 }
 0x140   : > { %v742_v15 = vpop.f32.mrf.mxu1  ;;  %v3010_v37 = vpop.f32.mrf.mxu0 }
 0x141   : > { %v743_v24 = vadd.f32 %v742_v15, %v3679_v26  ;;  %v3726_v51 = vadd.f32 %v2970_v32, %v751_v47 }
 0x142   : > { %v2981_v17 = vpop.f32.mrf.mxu1  ;;  %v1334_v53 = vpop.f32.mrf.mxu0 }
 0x143   : > { %v1187_v54 = vadd.f32 %v2981_v17, %v3681_v52  ;;  %v3729_v56 = vadd.f32 %v947_v35, %v743_v24 }
 0x144   : > { %v1106_v19 = vpop.f32.mrf.mxu1  ;;  %v3013_v59 = vpop.f32.mrf.mxu0 }
 0x145   : > { %v1185_v60 = vadd.f32 %v1106_v19, %v3683_v39  ;;  %v3732_v1 = vadd.f32 %v3009_v40, %v1187_v54 }
 0x146   : > { %v2982_v22 = vpop.f32.mrf.mxu1  ;;  %v1347_v25 = vpop.f32.mrf.mxu0 }
 0x147   : > { %v1188_v2 = vadd.f32 %v2982_v22, %v3685_v44  ;;  %v3735_v6 = vadd.f32 %v1331_v46, %v1185_v60 }
 0x148   : > { %v1109_v26 = vpop.f32.mrf.mxu1  ;;  %v3014_v38 = vpop.f32.mrf.mxu0 }
 0x149   : > { %v1186_v58 = vadd.f32 %v1109_v26, %v3687_v48  ;;  %v3738_v57 = vadd.f32 %v3010_v37, %v1188_v2 }
 0x14a   : > { %v2985_v52 = vpop.f32.mrf.mxu1  ;;  %v1350_v62 = vpop.f32.mrf.mxu0 }
 0x14b   : > { %v1191_v3 = vadd.f32 %v2985_v52, %v3689_v50  ;;  %v3741_v8 = vadd.f32 %v1334_v53, %v1186_v58 }
 0x14c   : > { %v1122_v39 = vpop.f32.mrf.mxu1  ;;  %v3017_v20 = vpop.f32.mrf.mxu0 }
 0x14d   : > { %v1189_v12 = vadd.f32 %v1122_v39, %v3691_v55  ;;  %v3744_v16 = vadd.f32 %v3013_v59, %v1191_v3 }
 0x14e   : > { %v2986_v44 = vpop.f32.mrf.mxu1  ;;  %v1363_v9 = vpop.f32.mrf.mxu0 }
 0x14f   : > { %v1192_v18 = vadd.f32 %v2986_v44, %v3693_v0  ;;  %v3747_v61 = vadd.f32 %v1347_v25, %v1189_v12 }
 0x150   : > { %v1125_v48 = vpop.f32.mrf.mxu1  ;;  %v3018_v23 = vpop.f32.mrf.mxu0 }
 0x151   : > { %v1190_v27 = vadd.f32 %v1125_v48, %v3695_v63  ;;  %v3750_v4 = vadd.f32 %v3014_v38, %v1192_v18 }
 0x152   : > { %v2989_v50 = vpop.f32.mrf.mxu1  ;;  %v1366_v29 = vpop.f32.mrf.mxu0 }
 0x153   : > { %v1195_v30 = vadd.f32 %v2989_v50, %v3697_v41  ;;  %v3753_v7 = vadd.f32 %v1350_v62, %v1190_v27 }
 0x154   : > { %v1138_v55 = vpop.f32.mrf.mxu1  ;;  %v3021_v32 = vpop.f32.mrf.mxu0 }
 0x155   : > { %v1193_v33 = vadd.f32 %v1138_v55, %v3699_v5  ;;  %v3756_v10 = vadd.f32 %v3017_v20, %v1195_v30 }
 0x156   : > { %v2990_v0 = vpop.f32.mrf.mxu1  ;;  %v1379_v35 = vpop.f32.mrf.mxu0 }
 0x157   : > { %v1196_v36 = vadd.f32 %v2990_v0, %v3702_v14  ;;  %v3759_v11 = vadd.f32 %v1363_v9, %v1193_v33 }
 0x158   : > { %v1141_v63 = vpop.f32.mrf.mxu1  ;;  %v3022_v40 = vpop.f32.mrf.mxu0 }
 0x159   : > { %v1194_v42 = vadd.f32 %v1141_v63, %v3705_v21  ;;  %v3762_v13 = vadd.f32 %v3018_v23, %v1196_v36 }
 0x15a   : > { %v2993_v41 = vpop.f32.mrf.mxu1  ;;  %v1382_v46 = vpop.f32.mrf.mxu0 }
 0x15b   : > { %v1199_v47 = vadd.f32 %v2993_v41, %v3708_v28  ;;  %v3765_v15 = vadd.f32 %v1366_v29, %v1194_v42 }
 0x15c   : > { %v1154_v5 = vpop.f32.mrf.mxu1  ;;  %v3025_v37 = vpop.f32.mrf.mxu0 }
 0x15d   : > { %v1197_v24 = vadd.f32 %v1154_v5, %v3711_v31  ;;  %v3768_v17 = vadd.f32 %v3021_v32, %v1199_v47 }
 0x15e   : > { %v2994_v14 = vpop.f32.mrf.mxu1  ;;  %v1395_v53 = vpop.f32.mrf.mxu0 }
 0x15f   : > { %v1200_v54 = vadd.f32 %v2994_v14, %v3714_v34  ;;  %v3771_v19 = vadd.f32 %v1379_v35, %v1197_v24 }
 0x160   : > { %v1157_v21 = vpop.f32.mrf.mxu1  ;;  %v3026_v59 = vpop.f32.mrf.mxu0 }
 0x161   : > { %v1198_v60 = vadd.f32 %v1157_v21, %v3717_v43  ;;  %v3774_v22 = vadd.f32 %v3022_v40, %v1200_v54 }
 0x162   : > { %v2997_v28 = vpop.f32.mrf.mxu1  ;;  %v1398_v25 = vpop.f32.mrf.mxu0 }
 0x163   : > { %v1203_v2 = vadd.f32 %v2997_v28, %v3720_v45  ;;  %v3777_v26 = vadd.f32 %v1382_v46, %v1198_v60 }
 0x164   : > { %v1170_v31 = vpop.f32.mrf.mxu1  ;;  %v3065_v38 = vpop.f32.mrf.mxu0 }
 0x165   : > { %v1201_v58 = vadd.f32 %v1170_v31, %v3723_v49  ;;  %v3780_v52 = vadd.f32 %v3025_v37, %v1203_v2 }
 0x166   : > { %v2998_v34 = vpop.f32.mrf.mxu1  ;;  %v1782_v62 = vpop.f32.mrf.mxu0 }
 0x167   : > { %v1204_v3 = vadd.f32 %v2998_v34, %v3726_v51  ;;  %v3783_v39 = vadd.f32 %v1395_v53, %v1201_v58 }
 0x168   : > { %v1173_v43 = vpop.f32.mrf.mxu1  ;;  %v3066_v20 = vpop.f32.mrf.mxu0 }
 0x169   : > { %3961 = vst [vmem:[#allocation6_spill] sm:$0xff] %v3783_v39  ;;  %v1202_v12 = vadd.f32 %v1173_v43, %v3729_v56  ;;  %v3786_v44 = vadd.f32 %v3026_v59, %v1204_v3 }
 0x16a   : > { %v3037_v45 = vpop.f32.mrf.mxu1  ;;  %v1785_v9 = vpop.f32.mrf.mxu0 }
 0x16b   : > { %3962 = vst [vmem:[#allocation7_spill] sm:$0xff] %v3786_v44  ;;  %v3788_v18 = vadd.f32 %v1398_v25, %v1202_v12  ;;  %v1637_v58 = vadd.f32 %v3037_v45, %v3732_v1  ;;  %v3853_v1 = vld [vmem:[%s3957_s2] ss:$0 sm:$0xff] }
 0x16c   : > { %v1556_v48 = vpop.f32.mrf.mxu1  ;;  %v3790_v49 = vpop.f32.mrf.mxu0 }
 0x16d   : > { %3963 = vst [vmem:[#allocation8_spill] sm:$0xff] %v3788_v18  ;;  %v1635_v43 = vadd.f32 %v1556_v48, %v3735_v6 }
 0x16e   : > { %v3038_v23 = vpop.f32.mrf.mxu1  ;;  %v3792_v27 = vpop.f32.mrf.mxu0 }
 0x170   : > { %v1559_v50 = vpop.f32.mrf.mxu1  ;;  %v3794_v51 = vpop.f32.mrf.mxu0 }
 0x172   : > { %v3041_v29 = vpop.f32.mrf.mxu1  ;;  %v3796_v30 = vpop.f32.mrf.mxu0 }
 0x174   : > { %v1572_v55 = vpop.f32.mrf.mxu1  ;;  %v3798_v56 = vpop.f32.mrf.mxu0 }
 0x176   : > { %v3042_v32 = vpop.f32.mrf.mxu1  ;;  %v3800_v33 = vpop.f32.mrf.mxu0 }
 0x178   : > { %v1575_v0 = vpop.f32.mrf.mxu1  ;;  %v3802_v35 = vpop.f32.mrf.mxu0 }
 0x17a   : > { %v3804_v36 = vpop.f32.mrf.mxu1  ;;  %v3806_v63 = vpop.f32.mrf.mxu0 }
 0x17c   : > { %v3808_v40 = vpop.f32.mrf.mxu1  ;;  %v3810_v42 = vpop.f32.mrf.mxu0 }
 0x17e   : > { %v3812_v41 = vpop.f32.mrf.mxu1  ;;  %v3814_v46 = vpop.f32.mrf.mxu0 }
 0x180   : > { %v3816_v47 = vpop.f32.mrf.mxu1  ;;  %v3818_v5 = vpop.f32.mrf.mxu0 }
 0x181   : > { %3964 = vst [vmem:[#allocation9_spill] sm:$0xff] %v3818_v5  ;;  %v1861_v5 = vadd.f32 %v1782_v62, %v1635_v43 }
 0x182   : > { %v3820_v37 = vpop.f32.mrf.mxu1  ;;  %v3822_v24 = vpop.f32.mrf.mxu0 }
 0x183   : > { %3965 = vst [vmem:[#allocation10_spill] sm:$0xff] %v3822_v24 }
 0x184   : > { %v3824_v14 = vpop.f32.mrf.mxu1  ;;  %v3826_v53 = vpop.f32.mrf.mxu0 }
 0x185   : > { %3966 = vst [vmem:[#allocation11_spill] sm:$0xff] %v3826_v53 }
 0x186   : > { %v3828_v54 = vpop.f32.mrf.mxu1  ;;  %v3830_v21 = vpop.f32.mrf.mxu0 }
 0x187   : > { %3967 = vst [vmem:[#allocation12_spill] sm:$0xff] %v3830_v21  ;;  %v1638_v21 = vadd.f32 %v3038_v23, %v3738_v57  ;;  %v1639_v57 = vadd.f32 %v1572_v55, %v3747_v61 }
 0x188   : > { %v3832_v59 = vpop.f32.mrf.mxu1  ;;  %v3834_v60 = vpop.f32.mrf.mxu0 }
 0x189   : > { %3968 = vst [vmem:[#allocation13_spill] sm:$0xff] %v3834_v60  ;;  %v1863_v60 = vadd.f32 %v3065_v38, %v1637_v58 }
 0x18a   : > { %v3836_v28 = vpop.f32.mrf.mxu1  ;;  %v3838_v25 = vpop.f32.mrf.mxu0 }
 0x18b   : > { %3969 = vst [vmem:[#allocation14_spill] sm:$0xff] %v3838_v25  ;;  %v1636_v25 = vadd.f32 %v1559_v50, %v3741_v8 }
 0x18c   : > { %v3840_v2 = vpop.f32.mrf.mxu1  ;;  %v3121_v31 = vpop.f32.mrf.mxu0 }
 0x18d   : > { %3970 = vst [vmem:[#allocation15_spill] sm:$0xff] %v3840_v2  ;;  %v1641_v2 = vadd.f32 %v3041_v29, %v3744_v16  ;;  %v1640_v16 = vadd.f32 %v1575_v0, %v3753_v7  ;;  %v1645_v7 = vadd.f32 %v3804_v36, %v3756_v10 }
 0x18e   : > { %v3843_v34 = vpop.f32.mrf.mxu1  ;;  %v2232_v3 = vpop.f32.mrf.mxu0 }
 0x18f   : > { %3971 = vst [vmem:[#allocation16_spill] sm:$0xff] %v3843_v34  ;;  %v1867_v61 = vadd.f32 %v3790_v49, %v1641_v2 }
 0x190   : > { %v3846_v12 = vpop.f32.mrf.mxu1  ;;  %v3122_v18 = vpop.f32.mrf.mxu0 }
 0x191   : > { %3972 = vst [vmem:[#allocation17_spill] sm:$0xff] %v3846_v12  ;;  %v1864_v12 = vadd.f32 %v3066_v20, %v1638_v21 }
 0x192   : > { %v3093_v53 = vpop.f32.mrf.mxu1  ;;  %v2235_v44 = vpop.f32.mrf.mxu0 }
 0x193   : > { %v2088_v24 = vadd.f32 %v3093_v53, %v1863_v60  ;;  %v1862_v53 = vadd.f32 %v1785_v9, %v1636_v25  ;;  %v1642_v60 = vadd.f32 %v3042_v32, %v3750_v4  ;;  %v1865_v4 = vadd.f32 %v3792_v27, %v1639_v57 }
 0x194   : > { %v2007_v45 = vpop.f32.mrf.mxu1  ;;  %v3125_v34 = vpop.f32.mrf.mxu0 }
 0x195   : > { %v2313_v6 = vadd.f32 %v3121_v31, %v2088_v24  ;;  %v2086_v48 = vadd.f32 %v2007_v45, %v1861_v5  ;;  %v1868_v31 = vadd.f32 %v3794_v51, %v1642_v60  ;;  %v1643_v51 = vadd.f32 %v3808_v40, %v3759_v11 }
 0x196   : > { %v3094_v38 = vpop.f32.mrf.mxu1  ;;  %v2248_v23 = vpop.f32.mrf.mxu0 }
 0x197   : > { %v2340_v8 = vadd.f32 %v3853_v1, %v2313_v6  ;;  %v2311_v62 = vadd.f32 %v2232_v3, %v2086_v48  ;;  %v2089_v50 = vadd.f32 %v3094_v38, %v1864_v12  ;;  %v1866_v6 = vadd.f32 %v3796_v30, %v1640_v16 }
 0x198   : > { %v2010_v58 = vpop.f32.mrf.mxu1  ;;  %v3126_v43 = vpop.f32.mrf.mxu0  ;;  %v1646_v38 = vadd.f32 %v3812_v41, %v3762_v13 }
 0x199   : > { %v2360_v39 = vmax.f32 %v2340_v8, 0.0  ;;  %v2338_v5 = vadd.f32 %v3853_v1, %v2311_v62  ;;  %v2314_v20 = vadd.f32 %v3122_v18, %v2089_v50  ;;  %v2087_v24 = vadd.f32 %v2010_v58, %v1862_v53 }
 0x19a   : > { %v3097_v9 = vpop.f32.mrf.mxu1  ;;  %v2251_v29 = vpop.f32.mrf.mxu0  ;;  %v1644_v58 = vadd.f32 %v3816_v47, %v3765_v15  ;;  %v1872_v15 = vadd.f32 %v3802_v35, %v1646_v38 }
 0x19b   : > { %v2743_v55 = vpack.c.bf16 %v2360_v39, %v2360_v39  ;;  %v2358_v32 = vmax.f32 %v2338_v5, 0.0  ;;  %v2341_v18 = vadd.f32 %v3853_v1, %v2314_v20  ;;  %v2312_v21 = vadd.f32 %v2235_v44, %v2087_v24 }
 0x19c   : > { %v2092_v0 = vadd.f32 %v3097_v9, %v1867_v61  ;;  %v2023_v25 = vpop.f32.mrf.mxu1  ;;  %v3129_v3 = vpop.f32.mrf.mxu0  ;;  %v1649_v24 = vadd.f32 %v3820_v37, %v3768_v17  ;;  %v1870_v37 = vadd.f32 %v3806_v63, %v1644_v58  ;;  %v1650_v63 = vadd.f32 %v3828_v54, %v3774_v22 }
 0x19d   : > { %2460 = vst [vmem:[%s3866_s7 + $0x8] sm:$0xf] %v2743_v55  ;;  %v2741_v49 = vpack.c.bf16 %v2358_v32, %v2358_v32  ;;  %v2361_v2 = vmax.f32 %v2341_v18, 0.0  ;;  %v2339_v27 = vadd.f32 %v3853_v1, %v2312_v21  ;;  %v2090_v12 = vadd.f32 %v2023_v25, %v1865_v4 }
 0x19e   : > { %v2317_v39 = vadd.f32 %v3125_v34, %v2092_v0  ;;  %v3098_v45 = vpop.f32.mrf.mxu1  ;;  %v2264_v44 = vpop.f32.mrf.mxu0  ;;  %v1871_v34 = vadd.f32 %v3798_v56, %v1645_v7 }
 0x19f   : > { %2458 = vst [vmem:[%s3866_s7] sm:$0xf] %v2741_v49  ;;  %v2744_v48 = vpack.c.bf16 %v2361_v2, %v2361_v2  ;;  %v2359_v10 = vmax.f32 %v2339_v27, 0.0  ;;  %v2315_v36 = vadd.f32 %v2248_v23, %v2090_v12  ;;  %v2093_v57 = vadd.f32 %v3098_v45, %v1868_v31 }
 0x1a0   : > { %v2344_v8 = vadd.f32 %v3853_v1, %v2317_v39  ;;  %v2026_v62 = vpop.f32.mrf.mxu1  ;;  %v3130_v50 = vpop.f32.mrf.mxu0  ;;  %v1648_v12 = vadd.f32 %v3832_v59, %v3777_v26 }
 0x1a1   : > { %2461 = vst [vmem:[%s3866_s7 + $0xc] sm:$0x3] %v2744_v48  ;;  %v2742_v30 = vpack.c.bf16 %v2359_v10, %v2359_v10  ;;  %v2342_v53 = vadd.f32 %v3853_v1, %v2315_v36  ;;  %v2318_v60 = vadd.f32 %v3126_v43, %v2093_v57  ;;  %v2091_v23 = vadd.f32 %v2026_v62, %v1866_v6 }
 0x1a2   : > { %v2364_v5 = vmax.f32 %v2344_v8, 0.0  ;;  %v3101_v11 = vpop.f32.mrf.mxu1  ;;  %v2267_v40 = vpop.f32.mrf.mxu0  ;;  %v1869_v43 = vadd.f32 %v3800_v33, %v1643_v51  ;;  %v1653_v57 = vadd.f32 %v3836_v28, %v3780_v52  ;;  %v3974_v8 = vld [vmem:[#allocation15_spill] sm:$0xff] }
 0x1a3   : > { %2459 = vst [vmem:[%s3866_s7 + $0x4] sm:$0x3] %v2742_v30  ;;  %v2362_v13 = vmax.f32 %v2342_v53, 0.0  ;;  %v2345_v41 = vadd.f32 %v3853_v1, %v2318_v60  ;;  %v2316_v20 = vadd.f32 %v2251_v29, %v2091_v23  ;;  %v2096_v56 = vadd.f32 %v3101_v11, %v1871_v34  ;;  %v3976_v60 = vld [vmem:[#allocation10_spill] sm:$0xff] }
 0x1a4   : > { %v2747_v16 = vpack.c.bf16 %v2364_v5, %v2364_v5  ;;  %v2039_v61 = vpop.f32.mrf.mxu1  ;;  %v3133_v47 = vpop.f32.mrf.mxu0  ;;  %v1647_v29 = vadd.f32 %v3824_v14, %v3771_v19  ;;  %v1874_v23 = vadd.f32 %v3976_v60, %v1648_v12 }
 0x1a5   : > { %v2745_v9 = vpack.c.bf16 %v2362_v13, %v2362_v13  ;;  %v2365_v4 = vmax.f32 %v2345_v41, 0.0  ;;  %v2343_v55 = vadd.f32 %v3853_v1, %v2316_v20  ;;  %v2321_v32 = vadd.f32 %v3129_v3, %v2096_v56  ;;  %v3978_v13 = vld [vmem:[#allocation16_spill] sm:$0xff] }
 0x1a6   : > { %2464 = vst [vmem:[%s3866_s7 + $0x18] sm:$0xf] %v2747_v16  ;;  %v2094_v18 = vadd.f32 %v2039_v61, %v1869_v43  ;;  %v3102_v17 = vpop.f32.mrf.mxu1  ;;  %v2280_v21 = vpop.f32.mrf.mxu0  ;;  %v1875_v3 = vadd.f32 %v3810_v42, %v1649_v24  ;;  %v1873_v6 = vadd.f32 %v3814_v46, %v1647_v29  ;;  %v3973_v46 = vld [vmem:[#allocation6_spill] sm:$0xff]  ;;  %v3979_v24 = vld [vmem:[#allocation11_spill] sm:$0xff] }
 0x1a7   : > { %2462 = vst [vmem:[%s3866_s7 + $0x10] sm:$0xf] %v2745_v9  ;;  %v2748_v33 = vpack.c.bf16 %v2365_v4, %v2365_v4  ;;  %v2363_v7 = vmax.f32 %v2343_v55, 0.0  ;;  %v2348_v35 = vadd.f32 %v3853_v1, %v2321_v32  ;;  %v2097_v0 = vadd.f32 %v3102_v17, %v1872_v15  ;;  %v3980_v55 = vld [vmem:[#allocation12_spill] sm:$0xff] }
 0x1a8   : > { %v2319_v25 = vadd.f32 %v2264_v44, %v2094_v18  ;;  %v2042_v31 = vpop.f32.mrf.mxu1  ;;  %v3134_v49 = vpop.f32.mrf.mxu0  ;;  %v1651_v62 = vadd.f32 %v3974_v8, %v3973_v46  ;;  %v1879_v16 = vadd.f32 %v3979_v24, %v1653_v57 }
 0x1a9   : > { %2465 = vst [vmem:[%s3866_s7 + $0x1c] sm:$0x3] %v2748_v33  ;;  %v2746_v19 = vpack.c.bf16 %v2363_v7, %v2363_v7  ;;  %v2368_v14 = vmax.f32 %v2348_v35, 0.0  ;;  %v2322_v2 = vadd.f32 %v3130_v50, %v2097_v0  ;;  %v2095_v27 = vadd.f32 %v2042_v31, %v1870_v37  ;;  %v3975_v50 = vld [vmem:[#allocation9_spill] sm:$0xff]  ;;  %v3981_v33 = vld [vmem:[#allocation8_spill] sm:$0xff] }
 0x1aa   : > { %v2346_v39 = vadd.f32 %v3853_v1, %v2319_v25  ;;  %v3105_v45 = vpop.f32.mrf.mxu1  ;;  %v2283_v36 = vpop.f32.mrf.mxu0  ;;  %v1876_v30 = vadd.f32 %v3975_v50, %v1650_v63  ;;  %v1877_v32 = vadd.f32 %v3980_v55, %v1651_v62  ;;  %v3982_v7 = vld [vmem:[#allocation17_spill] sm:$0xff] }
 0x1ab   : > { %2463 = vst [vmem:[%s3866_s7 + $0x14] sm:$0x3] %v2746_v19  ;;  %v2751_v42 = vpack.c.bf16 %v2368_v14, %v2368_v14  ;;  %v2349_v44 = vadd.f32 %v3853_v1, %v2322_v2  ;;  %v2320_v48 = vadd.f32 %v2267_v40, %v2095_v27  ;;  %v2100_v10 = vadd.f32 %v3105_v45, %v1875_v3  ;;  %v3977_v40 = vld [vmem:[#allocation7_spill] sm:$0xff]  ;;  %v3983_v31 = vld [vmem:[#allocation13_spill] sm:$0xff] }
 0x1ac   : > { %v2366_v51 = vmax.f32 %v2346_v39, 0.0  ;;  %v2055_v22 = vpop.f32.mrf.mxu1  ;;  %v3137_v11 = vpop.f32.mrf.mxu0  ;;  %v1654_v41 = vadd.f32 %v3978_v13, %v3977_v40  ;;  %v1652_v35 = vadd.f32 %v3982_v7, %v3981_v33 }
 0x1ad   : > { %2468 = vst [vmem:[%s3866_s7 + $0x28] sm:$0xf] %v2751_v42  ;;  %v2369_v26 = vmax.f32 %v2349_v44, 0.0  ;;  %v2347_v54 = vadd.f32 %v3853_v1, %v2320_v48  ;;  %v2325_v59 = vadd.f32 %v3133_v47, %v2100_v10  ;;  %v2098_v38 = vadd.f32 %v2055_v22, %v1873_v6  ;;  %v3984_v48 = vld [vmem:[#allocation14_spill] sm:$0xff] }
 0x1ae   : > { %v2749_v34 = vpack.c.bf16 %v2366_v51, %v2366_v51  ;;  %v3106_v53 = vpop.f32.mrf.mxu1  ;;  %v2296_v37 = vpop.f32.mrf.mxu0  ;;  %v1880_v3 = vadd.f32 %v3983_v31, %v1654_v41  ;;  %v1878_v10 = vadd.f32 %v3984_v48, %v1652_v35 }
 0x1af   : > { %v2752_v52 = vpack.c.bf16 %v2369_v26, %v2369_v26  ;;  %v2367_v28 = vmax.f32 %v2347_v54, 0.0  ;;  %v2352_v58 = vadd.f32 %v3853_v1, %v2325_v59  ;;  %v2323_v5 = vadd.f32 %v2280_v21, %v2098_v38 }
 0x1b0   : > { %2466 = vst [vmem:[%s3866_s7 + $0x20] sm:$0xf] %v2749_v34  ;;  %v2101_v20 = vadd.f32 %v3106_v53, %v1876_v30  ;;  %v2058_v56 = vpop.f32.mrf.mxu1  ;;  %v3138_v45 = vpop.f32.mrf.mxu0 }
 0x1b1   : > { %2469 = vst [vmem:[%s3866_s7 + $0x2c] sm:$0x3] %v2752_v52  ;;  %v2750_v43 = vpack.c.bf16 %v2367_v28, %v2367_v28  ;;  %v2372_v61 = vmax.f32 %v2352_v58, 0.0  ;;  %v2350_v15 = vadd.f32 %v3853_v1, %v2323_v5  ;;  %v2099_v47 = vadd.f32 %v2058_v56, %v1874_v23 }
 0x1b2   : > { %v2326_v9 = vadd.f32 %v3134_v49, %v2101_v20  ;;  %v3109_v4 = vpop.f32.mrf.mxu1  ;;  %v2299_v46 = vpop.f32.mrf.mxu0 }
 0x1b3   : > { %2467 = vst [vmem:[%s3866_s7 + $0x24] sm:$0x3] %v2750_v43  ;;  %v2755_v29 = vpack.c.bf16 %v2372_v61, %v2372_v61  ;;  %v2370_v18 = vmax.f32 %v2350_v15, 0.0  ;;  %v2324_v17 = vadd.f32 %v2283_v36, %v2099_v47  ;;  %v2104_v21 = vadd.f32 %v3109_v4, %v1879_v16 }
 0x1b4   : > { %v2353_v0 = vadd.f32 %v3853_v1, %v2326_v9  ;;  %v2071_v25 = vpop.f32.mrf.mxu1 }
 0x1b5   : > { %2472 = vst [vmem:[%s3866_s7 + $0x38] sm:$0xf] %v2755_v29  ;;  %v2753_v49 = vpack.c.bf16 %v2370_v18, %v2370_v18  ;;  %v2351_v19 = vadd.f32 %v3853_v1, %v2324_v17  ;;  %v2329_v14 = vadd.f32 %v3137_v11, %v2104_v21  ;;  %v2102_v2 = vadd.f32 %v2071_v25, %v1877_v32 }
 0x1b6   : > { %v2373_v27 = vmax.f32 %v2353_v0, 0.0  ;;  %v3110_v63 = vpop.f32.mrf.mxu1 }
 0x1b7   : > { %2470 = vst [vmem:[%s3866_s7 + $0x30] sm:$0xf] %v2753_v49  ;;  %v2371_v12 = vmax.f32 %v2351_v19, 0.0  ;;  %v2356_v39 = vadd.f32 %v3853_v1, %v2329_v14  ;;  %v2327_v6 = vadd.f32 %v2296_v37, %v2102_v2  ;;  %v2105_v42 = vadd.f32 %v3110_v63, %v1880_v3 }
 0x1b8   : > { %v2756_v44 = vpack.c.bf16 %v2373_v27, %v2373_v27  ;;  %v2074_v36 = vpop.f32.mrf.mxu1 }
 0x1b9   : > { %v2754_v57 = vpack.c.bf16 %v2371_v12, %v2371_v12  ;;  %v2376_v51 = vmax.f32 %v2356_v39, 0.0  ;;  %v2354_v22 = vadd.f32 %v3853_v1, %v2327_v6  ;;  %v2330_v26 = vadd.f32 %v3138_v45, %v2105_v42 }
 0x1ba   : > { %2473 = vst [vmem:[%s3866_s7 + $0x3c] sm:$0x3] %v2756_v44  ;;  %v2103_v54 = vadd.f32 %v2074_v36, %v1878_v10 }
 0x1bb   : > { %2471 = vst [vmem:[%s3866_s7 + $0x34] sm:$0x3] %v2754_v57  ;;  %v2759_v59 = vpack.c.bf16 %v2376_v51, %v2376_v51  ;;  %v2374_v38 = vmax.f32 %v2354_v22, 0.0  ;;  %v2357_v8 = vadd.f32 %v3853_v1, %v2330_v26 }
 0x1bc   : > { %v2328_v62 = vadd.f32 %v2299_v46, %v2103_v54 }
 0x1bd   : > { %2476 = vst [vmem:[%s3866_s7 + $0x48] sm:$0xf] %v2759_v59  ;;  %v2757_v34 = vpack.c.bf16 %v2374_v38, %v2374_v38  ;;  %v2377_v50 = vmax.f32 %v2357_v8, 0.0 }
 0x1be   : > { %v2355_v30 = vadd.f32 %v3853_v1, %v2328_v62 }
 0x1bf   : > { %2474 = vst [vmem:[%s3866_s7 + $0x40] sm:$0xf] %v2757_v34  ;;  %v2760_v53 = vpack.c.bf16 %v2377_v50, %v2377_v50 }
 0x1c0   : > { %v2375_v60 = vmax.f32 %v2355_v30, 0.0 }
 0x1c1   : > { %2477 = vst [vmem:[%s3866_s7 + $0x4c] sm:$0x3] %v2760_v53 }
 0x1c2   : > { %v2758_v23 = vpack.c.bf16 %v2375_v60, %v2375_v60 }
 0x1c4   : > { %2475 = vst [vmem:[%s3866_s7 + $0x44] sm:$0x3] %v2758_v23 }
 0x1c5 PF: > { %s14_s14 = sadd.s32 1, %s3274_s14   ;;  %s3985_s12 = smov %s3270_s13 }
 0x1c6   : > { %p11_p2 = scmp.ge.s32.totalorder %s14_s14, 4   ;;  %s3986_s13 = smov %s3988_s16 }
 0x1c8   :  { %13 = sbr.rel (!%p11_p2) target bundleno = 2 (0x2), region = 78 }
 0x1cd   :  { %2505 = vsyncpa [#allocation4], 1 }
 0x1ce   :  { %2507 = vsyncpa [#allocation4 + $0x1], 1 }

</bundles_post_ra>
